<compile_context>
chip_gen: v6e
topology: v6e:2x2x1
jax: 0.10.0
libtpu: 0.0.40
codegen_flags: <defaults>
</compile_context>

<pallas_src>
import functools

import jax
import jax.numpy as jnp
from jax.experimental import pallas as pl
from jax.experimental.pallas import tpu as pltpu


def _round_up(x, m):
    return ((x + m - 1) // m) * m


# ----------------------------------------------------------------------------
# Kernel 1: channels-as-rows matmul + bias + ReLU
#   out(Co, block_m) = relu(W(Co, Kd) @ X(Kd, block_m) + b(Co, 1))
# ----------------------------------------------------------------------------
def _matmul_bias_relu_kernel(w_ref, x_ref, b_ref, o_ref):
    acc = jnp.dot(w_ref[...], x_ref[...], preferred_element_type=jnp.float32)
    acc = acc + b_ref[...]                     # (Co,1) broadcasts over lanes
    o_ref[...] = jnp.maximum(acc, 0.0).astype(o_ref.dtype)


def matmul_bias_relu_cm(w2d, x2d, b2d, *, block_m=512):
    """relu(w2d @ x2d + b2d).

    w2d: (Co, Kd) bf16 (resident), x2d: (Kd, M) bf16 (streamed M tiles),
    b2d: (Co, 1) f32 (resident).  Returns (Co, M) f32 with M lane-dense.
    """
    Co, Kd = w2d.shape
    Kd2, M = x2d.shape
    assert Kd == Kd2
    tm = min(block_m, _round_up(M, 128))       # tm is always a multiple of 128
    Mp = _round_up(M, tm)
    if Mp != M:                                # pad M so blocks tile evenly
        x2d = jnp.pad(x2d, ((0, 0), (0, Mp - M)))

    flops = 2 * Co * Kd * Mp
    bytes_accessed = int(w2d.size) * 2 + Kd * Mp * 2 + int(b2d.size) * 4 + Co * Mp * 4

    out = pl.pallas_call(
        _matmul_bias_relu_kernel,
        out_shape=jax.ShapeDtypeStruct((Co, Mp), jnp.float32),
        grid=(Mp // tm,),
        in_specs=[
            pl.BlockSpec((Co, Kd), lambda j: (0, 0)),   # weights: resident
            pl.BlockSpec((Kd, tm), lambda j: (0, j)),   # activations: pipelined
            pl.BlockSpec((Co, 1), lambda j: (0, 0)),    # bias: resident
        ],
        out_specs=pl.BlockSpec((Co, tm), lambda j: (0, j)),
        compiler_params=pltpu.CompilerParams(
            dimension_semantics=("parallel",),          # shards tiles on v7x TCs
        ),
        cost_estimate=pl.CostEstimate(
            flops=flops, transcendentals=0, bytes_accessed=bytes_accessed),
    )(w2d, x2d, b2d)
    return out[:, :M] if Mp != M else out


# ----------------------------------------------------------------------------
# Kernel 2: 3x3 stride-1 max-pool (nn.MaxPool2d(3,1,1) -> implicit -inf pad)
# operating on (C*N, Hp, Wp) row blocks.
# ----------------------------------------------------------------------------
def _maxpool3x3_kernel(x_ref, o_ref, *, H, W):
    m = x_ref[:, 0:H, 0:W]
    for dh in range(3):
        for dw in range(3):
            if dh == 0 and dw == 0:
                continue
            m = jnp.maximum(m, x_ref[:, dh:dh + H, dw:dw + W])
    o_ref[...] = m


def maxpool3x3_same_cm(x_cnhw, *, rows_per_block=8):
    """MaxPool2d(3,1,1) on (C, N, H, W); returns (C, N*H*W) f32."""
    C, N, H, W = x_cnhw.shape
    R = C * N
    xp = jnp.pad(x_cnhw.reshape(R, H, W), ((0, 0), (1, 1), (1, 1)),
                 mode="constant", constant_values=-jnp.inf)
    tr = min(rows_per_block, R)
    Rp = _round_up(R, tr)
    if Rp != R:
        xp = jnp.pad(xp, ((0, Rp - R), (0, 0), (0, 0)),
                     mode="constant", constant_values=-jnp.inf)
    kernel = functools.partial(_maxpool3x3_kernel, H=H, W=W)
    out = pl.pallas_call(
        kernel,
        out_shape=jax.ShapeDtypeStruct((Rp, H, W), x_cnhw.dtype),
        grid=(Rp // tr,),
        in_specs=[pl.BlockSpec((tr, H + 2, W + 2), lambda i: (i, 0, 0))],
        out_specs=pl.BlockSpec((tr, H, W), lambda i: (i, 0, 0)),
        compiler_params=pltpu.CompilerParams(dimension_semantics=("parallel",)),
    )(xp)
    if Rp != R:
        out = out[:R]
    return out.reshape(C, N * H * W)


# ----------------------------------------------------------------------------
# Glue: params, im2col (channels-as-rows, bf16), conv wrappers
# ----------------------------------------------------------------------------
def init_conv_params(key, cout, cin, k):
    """Deterministic Conv2d-style init: weight (Cout, Cin, K, K), bias (Cout,)."""
    wkey, bkey = jax.random.split(key)
    fan_in = cin * k * k
    bound = 1.0 / (fan_in ** 0.5)
    w = jax.random.uniform(wkey, (cout, cin, k, k), jnp.float32, -bound, bound)
    b = jax.random.uniform(bkey, (cout,), jnp.float32, -bound, bound)
    return w, b


def _im2col_cm(x_cm_bf16, cin, N, H, W, K):
    """(Cin, N*H*W) bf16 -> (K*K*Cin, N*H*W) bf16, reflect-padded taps.

    Row ordering is (kh, kw, c) to match the weight reshape below.
    NOTE: reflect padding requires H, W > (K-1)//2 (same as the PyTorch ref).
    """
    p = (K - 1) // 2
    x4 = x_cm_bf16.reshape(cin, N, H, W)
    xp = jnp.pad(x4, ((0, 0), (0, 0), (p, p), (p, p)), mode="reflect")
    slabs = [xp[:, :, kh:kh + H, kw:kw + W]
             for kh in range(K) for kw in range(K)]
    cols = jnp.concatenate(slabs, axis=0)          # (K*K*Cin, N, H, W)
    return cols.reshape(K * K * cin, N * H * W)


def convkxk_relu_cm(x_cm, nhw, w, b, *, block_m=512):
    """Reflect-padded KxK conv + ReLU in the (C, M) layout."""
    N, H, W = nhw
    cout, cin, K, _ = w.shape
    cols = _im2col_cm(x_cm.astype(jnp.bfloat16), cin, N, H, W, K)
    w2 = jnp.transpose(w, (0, 2, 3, 1)).reshape(cout, K * K * cin)
    return matmul_bias_relu_cm(
        w2.astype(jnp.bfloat16), cols,
        b.reshape(cout, 1).astype(jnp.float32), block_m=block_m)


# ----------------------------------------------------------------------------
# FactorInception4
# ----------------------------------------------------------------------------
class FactorInception4Pallas:
    def __init__(self, key, dim_in, dim_1, dims_3, dims_5, dim_pool,
                 block_m=256):
        # block_m: M-tile size of the matmul pipeline. 512-1024 at production
        # activation sizes; 256 here so the small demo exercises a multi-step
        # pipelined grid.
        keys = jax.random.split(key, 6)
        self.dim_1, self.dims_3, self.dims_5, self.dim_pool = (
            dim_1, dims_3, dims_5, dim_pool)
        self.block_m = block_m
        self.redu1 = init_conv_params(keys[0], dim_1, dim_in, 1)
        self.redu2 = init_conv_params(keys[1], dims_3[0], dim_in, 1)
        self.conv1 = init_conv_params(keys[2], dims_3[1], dims_3[0], 3)
        self.redu3 = init_conv_params(keys[3], dims_5[0], dim_in, 1)
        self.conv2 = init_conv_params(keys[4], dims_5[1], dims_5[0], 5)
        self.redu4 = init_conv_params(keys[5], dim_pool, dim_in, 1)
        # Fused head: redu1 | redu2 | redu3 all read x -> one matmul.
        self.w_head = jnp.concatenate(
            [self.redu1[0].reshape(dim_1, dim_in),
             self.redu2[0].reshape(dims_3[0], dim_in),
             self.redu3[0].reshape(dims_5[0], dim_in)],
            axis=0).astype(jnp.bfloat16)
        self.b_head = jnp.concatenate(
            [self.redu1[1], self.redu2[1], self.redu3[1]]
        ).reshape(-1, 1).astype(jnp.float32)

    def __call__(self, x_nchw):
        N, Cin, H, W = x_nchw.shape
        M = N * H * W
        bm = self.block_m
        # channels-as-rows layout: (Cin, N*H*W) with the big M dim lane-dense.
        x_cnhw = jnp.transpose(x_nchw, (1, 0, 2, 3))
        x_cm = x_cnhw.reshape(Cin, M)

        d1, (d3r, _), (d5r, _) = self.dim_1, self.dims_3, self.dims_5

        # Fused 1x1 head (reads x once, single launch).
        head = matmul_bias_relu_cm(
            self.w_head, x_cm.astype(jnp.bfloat16), self.b_head, block_m=bm)
        x1 = head[:d1]                                     # branch-1 output
        x2_in = head[d1:d1 + d3r]
        x3_in = head[d1 + d3r:d1 + d3r + d5r]

        # 3x3 / 5x5 reflect-padded convs (tiled im2col matmuls).
        x2 = convkxk_relu_cm(x2_in, (N, H, W), *self.conv1, block_m=bm)
        x3 = convkxk_relu_cm(x3_in, (N, H, W), *self.conv2, block_m=bm)

        # MaxPool(3,1,1) + 1x1 reduction.
        pooled = maxpool3x3_same_cm(x_cnhw)
        w4, b4 = self.redu4
        x4 = matmul_bias_relu_cm(
            w4.reshape(self.dim_pool, Cin).astype(jnp.bfloat16),
            pooled.astype(jnp.bfloat16),
            b4.reshape(-1, 1).astype(jnp.float32), block_m=bm)

        out_cm = jnp.concatenate([x1, x2, x3, x4], axis=0)  # (Ctot, M)
        ctot = out_cm.shape[0]
        return jnp.transpose(out_cm.reshape(ctot, N, H, W), (1, 0, 2, 3))


if __name__ == "__main__":
    key = jax.random.PRNGKey(0)
    pkey, xkey = jax.random.split(key)

    N, Cin, H, W = 2, 4, 16, 16
    dim_1, dims_3, dims_5, dim_pool = 8, (4, 8), (4, 8), 8

    model = FactorInception4Pallas(pkey, Cin, dim_1, dims_3, dims_5, dim_pool)
    x = jax.random.normal(xkey, (N, Cin, H, W), jnp.float32)

    fwd = jax.jit(lambda inp: model(inp))
    out = jax.block_until_ready(fwd(x))

    expected_c = dim_1 + dims_3[1] + dims_5[1] + dim_pool
    assert out.shape == (N, expected_c, H, W), out.shape
    assert bool(jnp.all(jnp.isfinite(out)))
    print("KERNEL_OK")
</pallas_src>

<mosaic_0001>
module attributes {stable_mosaic.version = 11 : i64} {
  func.func @_matmul_bias_relu_kernel(%arg0: i32, %arg1: memref<16x4xbf16, #tpu.memory_space<vmem>>, %arg2: memref<4x256xbf16, #tpu.memory_space<vmem>>, %arg3: memref<16x1xf32, #tpu.memory_space<vmem>>, %arg4: memref<16x256xf32, #tpu.memory_space<vmem>>) attributes {dimension_semantics = [#tpu.dimension_semantics<parallel>], iteration_bounds = array<i64: 2>, scalar_prefetch = 0 : i64, scratch_operands = 0 : i64, tpu.core_type = #tpu.core_type<tc>, window_params = [{pipeline_mode = #tpu.pipeline_mode<synchronous>, transform_indices = @transform_0, window_bounds = array<i64: 16, 4>}, {transform_indices = @transform_1, window_bounds = array<i64: 4, 256>}, {pipeline_mode = #tpu.pipeline_mode<synchronous>, transform_indices = @transform_2, window_bounds = array<i64: 16, 1>}, {transform_indices = @transform_3, window_bounds = array<i64: 16, 256>}]} {
    %c0 = arith.constant 0 : index
    %c0_0 = arith.constant 0 : index
    %0 = vector.load %arg1[%c0, %c0_0] : memref<16x4xbf16, #tpu.memory_space<vmem>>, vector<16x4xbf16>
    %c0_1 = arith.constant 0 : index
    %c0_2 = arith.constant 0 : index
    %1 = vector.load %arg2[%c0_1, %c0_2] : memref<4x256xbf16, #tpu.memory_space<vmem>>, vector<4x256xbf16>
    %cst = arith.constant dense<0.000000e+00> : vector<16x256xf32>
    %2 = tpu.matmul %0, %1, %cst {dimension_numbers = #tpu.dot_dimension_numbers<[1], [0], [0], [1], [0, 0, 1, 1], [], []>} : vector<16x4xbf16>, vector<4x256xbf16>, vector<16x256xf32> -> vector<16x256xf32>
    %c0_3 = arith.constant 0 : index
    %c0_4 = arith.constant 0 : index
    %3 = vector.load %arg3[%c0_3, %c0_4] : memref<16x1xf32, #tpu.memory_space<vmem>>, vector<16x1xf32>
    %4 = vector.broadcast %3 : vector<16x1xf32> to vector<16x256xf32>
    %5 = arith.addf %2, %4 : vector<16x256xf32>
    %cst_5 = arith.constant 0.000000e+00 : f32
    %6 = vector.broadcast %cst_5 : f32 to vector<16x256xf32>
    %7 = arith.maximumf %5, %6 : vector<16x256xf32>
    %c0_6 = arith.constant 0 : index
    %c0_7 = arith.constant 0 : index
    %8 = vector.load %arg4[%c0_6, %c0_7] : memref<16x256xf32, #tpu.memory_space<vmem>>, vector<16x256xf32>
    tpu.vector_store %arg4[%c0_6, %c0_7], %7 {strides = array<i32>} : memref<16x256xf32, #tpu.memory_space<vmem>>, vector<16x256xf32>,
    return
  }
  func.func @transform_0(%arg0: i32) -> (i32, i32) {
    %c0_i32 = arith.constant 0 : i32
    %c0_i32_0 = arith.constant 0 : i32
    %c0_i32_1 = arith.constant 0 : i32
    return %c0_i32, %c0_i32_0 : i32, i32
  }
  func.func @transform_1(%arg0: i32) -> (i32, i32) {
    %c0_i32 = arith.constant 0 : i32
    %c0_i32_0 = arith.constant 0 : i32
    return %c0_i32, %arg0 : i32, i32
  }
  func.func @transform_2(%arg0: i32) -> (i32, i32) {
    %c0_i32 = arith.constant 0 : i32
    %c0_i32_0 = arith.constant 0 : i32
    %c0_i32_1 = arith.constant 0 : i32
    return %c0_i32, %c0_i32_0 : i32, i32
  }
  func.func @transform_3(%arg0: i32) -> (i32, i32) {
    %c0_i32 = arith.constant 0 : i32
    %c0_i32_0 = arith.constant 0 : i32
    return %c0_i32, %arg0 : i32, i32
  }
}

module attributes {stable_mosaic.version = 11 : i64} {
  func.func @_maxpool3x3_kernel(%arg0: i32, %arg1: memref<8x18x18xf32, #tpu.memory_space<vmem>>, %arg2: memref<8x16x16xf32, #tpu.memory_space<vmem>>) attributes {dimension_semantics = [#tpu.dimension_semantics<parallel>], iteration_bounds = array<i64: 1>, scalar_prefetch = 0 : i64, scratch_operands = 0 : i64, tpu.core_type = #tpu.core_type<tc>, window_params = [{transform_indices = @transform_0, window_bounds = array<i64: 8, 18, 18>}, {transform_indices = @transform_1, window_bounds = array<i64: 8, 16, 16>}]} {
    %c0 = arith.constant 0 : index
    %c0_0 = arith.constant 0 : index
    %c0_1 = arith.constant 0 : index
    %0 = vector.load %arg1[%c0, %c0_0, %c0_1] : memref<8x18x18xf32, #tpu.memory_space<vmem>>, vector<8x16x16xf32>
    %c0_2 = arith.constant 0 : index
    %c0_3 = arith.constant 0 : index
    %c1 = arith.constant 1 : index
    %1 = vector.load %arg1[%c0_2, %c0_3, %c1] : memref<8x18x18xf32, #tpu.memory_space<vmem>>, vector<8x16x16xf32>
    %2 = arith.maximumf %0, %1 : vector<8x16x16xf32>
    %c0_4 = arith.constant 0 : index
    %c0_5 = arith.constant 0 : index
    %c2 = arith.constant 2 : index
    %3 = vector.load %arg1[%c0_4, %c0_5, %c2] : memref<8x18x18xf32, #tpu.memory_space<vmem>>, vector<8x16x16xf32>
    %4 = arith.maximumf %2, %3 : vector<8x16x16xf32>
    %c0_6 = arith.constant 0 : index
    %c1_7 = arith.constant 1 : index
    %c0_8 = arith.constant 0 : index
    %5 = vector.load %arg1[%c0_6, %c1_7, %c0_8] : memref<8x18x18xf32, #tpu.memory_space<vmem>>, vector<8x16x16xf32>
    %6 = arith.maximumf %4, %5 : vector<8x16x16xf32>
    %c0_9 = arith.constant 0 : index
    %c1_10 = arith.constant 1 : index
    %c1_11 = arith.constant 1 : index
    %7 = vector.load %arg1[%c0_9, %c1_10, %c1_11] : memref<8x18x18xf32, #tpu.memory_space<vmem>>, vector<8x16x16xf32>
    %8 = arith.maximumf %6, %7 : vector<8x16x16xf32>
    %c0_12 = arith.constant 0 : index
    %c1_13 = arith.constant 1 : index
    %c2_14 = arith.constant 2 : index
    %9 = vector.load %arg1[%c0_12, %c1_13, %c2_14] : memref<8x18x18xf32, #tpu.memory_space<vmem>>, vector<8x16x16xf32>
    %10 = arith.maximumf %8, %9 : vector<8x16x16xf32>
    %c0_15 = arith.constant 0 : index
    %c2_16 = arith.constant 2 : index
    %c0_17 = arith.constant 0 : index
    %11 = vector.load %arg1[%c0_15, %c2_16, %c0_17] : memref<8x18x18xf32, #tpu.memory_space<vmem>>, vector<8x16x16xf32>
    %12 = arith.maximumf %10, %11 : vector<8x16x16xf32>
    %c0_18 = arith.constant 0 : index
    %c2_19 = arith.constant 2 : index
    %c1_20 = arith.constant 1 : index
    %13 = vector.load %arg1[%c0_18, %c2_19, %c1_20] : memref<8x18x18xf32, #tpu.memory_space<vmem>>, vector<8x16x16xf32>
    %14 = arith.maximumf %12, %13 : vector<8x16x16xf32>
    %c0_21 = arith.constant 0 : index
    %c2_22 = arith.constant 2 : index
    %c2_23 = arith.constant 2 : index
    %15 = vector.load %arg1[%c0_21, %c2_22, %c2_23] : memref<8x18x18xf32, #tpu.memory_space<vmem>>, vector<8x16x16xf32>
    %16 = arith.maximumf %14, %15 : vector<8x16x16xf32>
    %c0_24 = arith.constant 0 : index
    %c0_25 = arith.constant 0 : index
    %c0_26 = arith.constant 0 : index
    %17 = vector.load %arg2[%c0_24, %c0_25, %c0_26] : memref<8x16x16xf32, #tpu.memory_space<vmem>>, vector<8x16x16xf32>
    tpu.vector_store %arg2[%c0_24, %c0_25, %c0_26], %16 {strides = array<i32>} : memref<8x16x16xf32, #tpu.memory_space<vmem>>, vector<8x16x16xf32>,
    return
  }
  func.func @transform_0(%arg0: i32) -> (i32, i32, i32) {
    %c0_i32 = arith.constant 0 : i32
    %c0_i32_0 = arith.constant 0 : i32
    %c0_i32_1 = arith.constant 0 : i32
    return %arg0, %c0_i32, %c0_i32_0 : i32, i32, i32
  }
  func.func @transform_1(%arg0: i32) -> (i32, i32, i32) {
    %c0_i32 = arith.constant 0 : i32
    %c0_i32_0 = arith.constant 0 : i32
    %c0_i32_1 = arith.constant 0 : i32
    return %arg0, %c0_i32, %c0_i32_0 : i32, i32, i32
  }
}

module attributes {stable_mosaic.version = 11 : i64} {
  func.func @_matmul_bias_relu_kernel(%arg0: i32, %arg1: memref<8x4xbf16, #tpu.memory_space<vmem>>, %arg2: memref<4x256xbf16, #tpu.memory_space<vmem>>, %arg3: memref<8x1xf32, #tpu.memory_space<vmem>>, %arg4: memref<8x256xf32, #tpu.memory_space<vmem>>) attributes {dimension_semantics = [#tpu.dimension_semantics<parallel>], iteration_bounds = array<i64: 2>, scalar_prefetch = 0 : i64, scratch_operands = 0 : i64, tpu.core_type = #tpu.core_type<tc>, window_params = [{pipeline_mode = #tpu.pipeline_mode<synchronous>, transform_indices = @transform_0, window_bounds = array<i64: 8, 4>}, {transform_indices = @transform_1, window_bounds = array<i64: 4, 256>}, {pipeline_mode = #tpu.pipeline_mode<synchronous>, transform_indices = @transform_2, window_bounds = array<i64: 8, 1>}, {transform_indices = @transform_3, window_bounds = array<i64: 8, 256>}]} {
    %c0 = arith.constant 0 : index
    %c0_0 = arith.constant 0 : index
    %0 = vector.load %arg1[%c0, %c0_0] : memref<8x4xbf16, #tpu.memory_space<vmem>>, vector<8x4xbf16>
    %c0_1 = arith.constant 0 : index
    %c0_2 = arith.constant 0 : index
    %1 = vector.load %arg2[%c0_1, %c0_2] : memref<4x256xbf16, #tpu.memory_space<vmem>>, vector<4x256xbf16>
    %cst = arith.constant dense<0.000000e+00> : vector<8x256xf32>
    %2 = tpu.matmul %0, %1, %cst {dimension_numbers = #tpu.dot_dimension_numbers<[1], [0], [0], [1], [0, 0, 1, 1], [], []>} : vector<8x4xbf16>, vector<4x256xbf16>, vector<8x256xf32> -> vector<8x256xf32>
    %c0_3 = arith.constant 0 : index
    %c0_4 = arith.constant 0 : index
    %3 = vector.load %arg3[%c0_3, %c0_4] : memref<8x1xf32, #tpu.memory_space<vmem>>, vector<8x1xf32>
    %4 = vector.broadcast %3 : vector<8x1xf32> to vector<8x256xf32>
    %5 = arith.addf %2, %4 : vector<8x256xf32>
    %cst_5 = arith.constant 0.000000e+00 : f32
    %6 = vector.broadcast %cst_5 : f32 to vector<8x256xf32>
    %7 = arith.maximumf %5, %6 : vector<8x256xf32>
    %c0_6 = arith.constant 0 : index
    %c0_7 = arith.constant 0 : index
    %8 = vector.load %arg4[%c0_6, %c0_7] : memref<8x256xf32, #tpu.memory_space<vmem>>, vector<8x256xf32>
    tpu.vector_store %arg4[%c0_6, %c0_7], %7 {strides = array<i32>} : memref<8x256xf32, #tpu.memory_space<vmem>>, vector<8x256xf32>,
    return
  }
  func.func @transform_0(%arg0: i32) -> (i32, i32) {
    %c0_i32 = arith.constant 0 : i32
    %c0_i32_0 = arith.constant 0 : i32
    %c0_i32_1 = arith.constant 0 : i32
    return %c0_i32, %c0_i32_0 : i32, i32
  }
  func.func @transform_1(%arg0: i32) -> (i32, i32) {
    %c0_i32 = arith.constant 0 : i32
    %c0_i32_0 = arith.constant 0 : i32
    return %c0_i32, %arg0 : i32, i32
  }
  func.func @transform_2(%arg0: i32) -> (i32, i32) {
    %c0_i32 = arith.constant 0 : i32
    %c0_i32_0 = arith.constant 0 : i32
    %c0_i32_1 = arith.constant 0 : i32
    return %c0_i32, %c0_i32_0 : i32, i32
  }
  func.func @transform_3(%arg0: i32) -> (i32, i32) {
    %c0_i32 = arith.constant 0 : i32
    %c0_i32_0 = arith.constant 0 : i32
    return %c0_i32, %arg0 : i32, i32
  }
}

module attributes {stable_mosaic.version = 11 : i64} {
  func.func @_matmul_bias_relu_kernel(%arg0: i32, %arg1: memref<8x36xbf16, #tpu.memory_space<vmem>>, %arg2: memref<36x256xbf16, #tpu.memory_space<vmem>>, %arg3: memref<8x1xf32, #tpu.memory_space<vmem>>, %arg4: memref<8x256xf32, #tpu.memory_space<vmem>>) attributes {dimension_semantics = [#tpu.dimension_semantics<parallel>], iteration_bounds = array<i64: 2>, scalar_prefetch = 0 : i64, scratch_operands = 0 : i64, tpu.core_type = #tpu.core_type<tc>, window_params = [{pipeline_mode = #tpu.pipeline_mode<synchronous>, transform_indices = @transform_0, window_bounds = array<i64: 8, 36>}, {transform_indices = @transform_1, window_bounds = array<i64: 36, 256>}, {pipeline_mode = #tpu.pipeline_mode<synchronous>, transform_indices = @transform_2, window_bounds = array<i64: 8, 1>}, {transform_indices = @transform_3, window_bounds = array<i64: 8, 256>}]} {
    %c0 = arith.constant 0 : index
    %c0_0 = arith.constant 0 : index
    %0 = vector.load %arg1[%c0, %c0_0] : memref<8x36xbf16, #tpu.memory_space<vmem>>, vector<8x36xbf16>
    %c0_1 = arith.constant 0 : index
    %c0_2 = arith.constant 0 : index
    %1 = vector.load %arg2[%c0_1, %c0_2] : memref<36x256xbf16, #tpu.memory_space<vmem>>, vector<36x256xbf16>
    %cst = arith.constant dense<0.000000e+00> : vector<8x256xf32>
    %2 = tpu.matmul %0, %1, %cst {dimension_numbers = #tpu.dot_dimension_numbers<[1], [0], [0], [1], [0, 0, 1, 1], [], []>} : vector<8x36xbf16>, vector<36x256xbf16>, vector<8x256xf32> -> vector<8x256xf32>
    %c0_3 = arith.constant 0 : index
    %c0_4 = arith.constant 0 : index
    %3 = vector.load %arg3[%c0_3, %c0_4] : memref<8x1xf32, #tpu.memory_space<vmem>>, vector<8x1xf32>
    %4 = vector.broadcast %3 : vector<8x1xf32> to vector<8x256xf32>
    %5 = arith.addf %2, %4 : vector<8x256xf32>
    %cst_5 = arith.constant 0.000000e+00 : f32
    %6 = vector.broadcast %cst_5 : f32 to vector<8x256xf32>
    %7 = arith.maximumf %5, %6 : vector<8x256xf32>
    %c0_6 = arith.constant 0 : index
    %c0_7 = arith.constant 0 : index
    %8 = vector.load %arg4[%c0_6, %c0_7] : memref<8x256xf32, #tpu.memory_space<vmem>>, vector<8x256xf32>
    tpu.vector_store %arg4[%c0_6, %c0_7], %7 {strides = array<i32>} : memref<8x256xf32, #tpu.memory_space<vmem>>, vector<8x256xf32>,
    return
  }
  func.func @transform_0(%arg0: i32) -> (i32, i32) {
    %c0_i32 = arith.constant 0 : i32
    %c0_i32_0 = arith.constant 0 : i32
    %c0_i32_1 = arith.constant 0 : i32
    return %c0_i32, %c0_i32_0 : i32, i32
  }
  func.func @transform_1(%arg0: i32) -> (i32, i32) {
    %c0_i32 = arith.constant 0 : i32
    %c0_i32_0 = arith.constant 0 : i32
    return %c0_i32, %arg0 : i32, i32
  }
  func.func @transform_2(%arg0: i32) -> (i32, i32) {
    %c0_i32 = arith.constant 0 : i32
    %c0_i32_0 = arith.constant 0 : i32
    %c0_i32_1 = arith.constant 0 : i32
    return %c0_i32, %c0_i32_0 : i32, i32
  }
  func.func @transform_3(%arg0: i32) -> (i32, i32) {
    %c0_i32 = arith.constant 0 : i32
    %c0_i32_0 = arith.constant 0 : i32
    return %c0_i32, %arg0 : i32, i32
  }
}

module attributes {stable_mosaic.version = 11 : i64} {
  func.func @_matmul_bias_relu_kernel(%arg0: i32, %arg1: memref<8x100xbf16, #tpu.memory_space<vmem>>, %arg2: memref<100x256xbf16, #tpu.memory_space<vmem>>, %arg3: memref<8x1xf32, #tpu.memory_space<vmem>>, %arg4: memref<8x256xf32, #tpu.memory_space<vmem>>) attributes {dimension_semantics = [#tpu.dimension_semantics<parallel>], iteration_bounds = array<i64: 2>, scalar_prefetch = 0 : i64, scratch_operands = 0 : i64, tpu.core_type = #tpu.core_type<tc>, window_params = [{pipeline_mode = #tpu.pipeline_mode<synchronous>, transform_indices = @transform_0, window_bounds = array<i64: 8, 100>}, {transform_indices = @transform_1, window_bounds = array<i64: 100, 256>}, {pipeline_mode = #tpu.pipeline_mode<synchronous>, transform_indices = @transform_2, window_bounds = array<i64: 8, 1>}, {transform_indices = @transform_3, window_bounds = array<i64: 8, 256>}]} {
    %c0 = arith.constant 0 : index
    %c0_0 = arith.constant 0 : index
    %0 = vector.load %arg1[%c0, %c0_0] : memref<8x100xbf16, #tpu.memory_space<vmem>>, vector<8x100xbf16>
    %c0_1 = arith.constant 0 : index
    %c0_2 = arith.constant 0 : index
    %1 = vector.load %arg2[%c0_1, %c0_2] : memref<100x256xbf16, #tpu.memory_space<vmem>>, vector<100x256xbf16>
    %cst = arith.constant dense<0.000000e+00> : vector<8x256xf32>
    %2 = tpu.matmul %0, %1, %cst {dimension_numbers = #tpu.dot_dimension_numbers<[1], [0], [0], [1], [0, 0, 1, 1], [], []>} : vector<8x100xbf16>, vector<100x256xbf16>, vector<8x256xf32> -> vector<8x256xf32>
    %c0_3 = arith.constant 0 : index
    %c0_4 = arith.constant 0 : index
    %3 = vector.load %arg3[%c0_3, %c0_4] : memref<8x1xf32, #tpu.memory_space<vmem>>, vector<8x1xf32>
    %4 = vector.broadcast %3 : vector<8x1xf32> to vector<8x256xf32>
    %5 = arith.addf %2, %4 : vector<8x256xf32>
    %cst_5 = arith.constant 0.000000e+00 : f32
    %6 = vector.broadcast %cst_5 : f32 to vector<8x256xf32>
    %7 = arith.maximumf %5, %6 : vector<8x256xf32>
    %c0_6 = arith.constant 0 : index
    %c0_7 = arith.constant 0 : index
    %8 = vector.load %arg4[%c0_6, %c0_7] : memref<8x256xf32, #tpu.memory_space<vmem>>, vector<8x256xf32>
    tpu.vector_store %arg4[%c0_6, %c0_7], %7 {strides = array<i32>} : memref<8x256xf32, #tpu.memory_space<vmem>>, vector<8x256xf32>,
    return
  }
  func.func @transform_0(%arg0: i32) -> (i32, i32) {
    %c0_i32 = arith.constant 0 : i32
    %c0_i32_0 = arith.constant 0 : i32
    %c0_i32_1 = arith.constant 0 : i32
    return %c0_i32, %c0_i32_0 : i32, i32
  }
  func.func @transform_1(%arg0: i32) -> (i32, i32) {
    %c0_i32 = arith.constant 0 : i32
    %c0_i32_0 = arith.constant 0 : i32
    return %c0_i32, %arg0 : i32, i32
  }
  func.func @transform_2(%arg0: i32) -> (i32, i32) {
    %c0_i32 = arith.constant 0 : i32
    %c0_i32_0 = arith.constant 0 : i32
    %c0_i32_1 = arith.constant 0 : i32
    return %c0_i32, %c0_i32_0 : i32, i32
  }
  func.func @transform_3(%arg0: i32) -> (i32, i32) {
    %c0_i32 = arith.constant 0 : i32
    %c0_i32_0 = arith.constant 0 : i32
    return %c0_i32, %arg0 : i32, i32
  }
}

</mosaic_0001>

<bundles_post_ra>
// kernel: _lambda_.5
= control target key start
LH: loop header
LB: loop body
LE: loop exit
PB: predicated region body
PF: predicated region fallthrough
CT: control target
= control target key end

     0   :  { %s433_s12 = smov 0   ;;  %s435_s13 = smov 0   ;;  %s492_s0 = inlined_call_operand.vmem [shape: bf16[16,4], index: 0, kind: input, shape index: {}]   ;;  %s493_s1 = inlined_call_operand.vmem [shape: bf16[4,512], index: 1, kind: input, shape index: {}]   ;;  %s494_s2 = inlined_call_operand.vmem [shape: f32[16,1], index: 2, kind: input, shape index: {}]   ;;  %s495_s3 = inlined_call_operand.vmem [shape: f32[16,512], index: 3, kind: output, shape index: {}]  }
   0x1   :  { %s437_s14 = smov 0  }
   0x2 LB: > { %s446_s15 = sadd.s32 4294967295, %s410_s14   ;;  %s448_s16 = sadd.s32 1, %s410_s14   ;;  %s410_s14 = sphi %s437_s14, %s499_s14   ;;  %s406_s13 = sphi %s435_s13, %s498_s13   ;;  %s402_s12 = sphi %s433_s12, %s497_s12  }
   0x3   : > { %s85_s17 = ssub.s32 %s410_s14, %s448_s16  ;;  %s88_s18 = sadd.s32 1, %s406_s13 }
   0x4   : > { %p86_p0 = scmp.eq.s32.totalorder %s85_s17, 0  ;;  %p98_p1 = scmp.ne.s32.totalorder %s406_s13, %s402_s12 }
   0x5   : > { %p99_p2 = scmp.eq.s32.totalorder %s446_s15, 1  ;;  %p347_p3 = scmp.ge.s32.totalorder %s410_s14, 1 }
   0x6   : > { %s456_s19 = scalar_select %p86_p0, %s406_s13, %s88_s18  }
   0x7   : > { %p458_p4 = por %p99_p2, %p98_p1  ;;  %p138_p5 = scmp.lt.s32.totalorder %s410_s14, 3 }
   0x9   : > { %p139_p6 = pnand %p347_p3, %p138_p5 }
   0xa   : > { %s349_s21 = sshll.u32 (!%p139_p6), %s446_s15, 1  ;;  %s158_s5 = sand.u32 (!%p139_p6), 1, %s402_s12  }
   0xb   : > { %142 = sbr.rel (%p139_p6) target bundleno = 238 (0xee), region = 32  ;;  %p162_p7 = scmp.lt.s32.totalorder (!%p139_p6), %s349_s21, 3 }
   0xc   : > { %s348_s6 = sshll.u32 (!%p139_p6), %s158_s5, 5 }
   0xd   : > { %s160_s7 = scalar_lea.vmem (!%p139_p6), [#allocation2], %s348_s6 }
  0x10   : > { %v412_v0 = vmov 0   ;;  %v172_v1 = vld [vmem:[%s494_s2] sm:$0xff]  ;;  %s501_s21 = smov (!%p162_p7, %s349_s21), 3  ;;  %v173_v2 = vld [vmem:[%s494_s2 + $0x8] sm:$0xff]  ;;  %vm202_vm0 = vcmask 1041408   ;;  %vm198_vm1 = vcmask 31744  }
  0x11   : > { %241 = vmatprep.mubr.bf16.mxu0 %v412_v0  ;;  %386 = vset.pattern.permute.xlu0 %v412_v0  ;;  %s350_s26 = sshll.u32 %s501_s21, 1  ;;  %v387_v6 = vld [vmem:[%s492_s0] sm:$0xff]   ;;  %s360_s8 = sshll.u32 (%p458_p4), %s446_s15, 4 }
  0x12   : > { %176 = vperm.xlu0 %386, %v172_v1   ;;  %s165_s29 = scalar_lea.vmem %s493_s1, %s350_s26  ;;  %s269_s11 = scalar_lea.vmem (%p458_p4), %s495_s3, %s360_s8 }
  0x13   : > { %v352_v3 = vld.sshfl [vmem:[%s165_s29] sm:$0x33 pattern:$0x76325410] }
  0x14   : > { %v197_v4 = vcombine.high %v352_v3, %v352_v3  ;;  %v204_v5 = vsel %vm202_vm0, %v352_v3, 0 }
  0x16   : > { %181 = vperm.xlu0 %386, %v173_v2   ;;  %353 = vmatprep.subr.msk.bf16.mxu0 %vm202_vm0, %v197_v4 }
  0x17   : > { %224 = vmatpush1.bf16.msra.mxu0 %v204_v5 }
  0x1a   : > { %354 = vmatmul.mubr.msk.bf16.vlgmr.msra.gmra.mxu0 %vm198_vm1, %v387_v6 }
  0x8d   : > { %v177_v7 = vpop.permute.xlu0 %176 }
  0x91   : > { %v182_v13 = vpop.permute.xlu0 %181 }
  0xda   : > { %v243_v8 = vpop.f32.mrf.mxu0 }
  0xdb   : > { %v244_v9 = vadd.f32 %v243_v8, %v177_v7 }
  0xdc   : > { %v245_v10 = vpop.f32.mrf.mxu0 }
  0xdd   : > { %v252_v11 = vmax.f32 %v244_v9, 0.0  ;;  %v246_v12 = vadd.f32 %v245_v10, %v177_v7 }
  0xde   : > { %v247_v14 = vpop.f32.mrf.mxu0 }
  0xdf   : > { %256 = vst [vmem:[%s160_s7] sm:$0xff] %v252_v11  ;;  %v253_v15 = vmax.f32 %v246_v12, 0.0  ;;  %v248_v16 = vadd.f32 %v247_v14, %v182_v13 }
  0xe0   : > { %v249_v17 = vpop.f32.mrf.mxu0 }
  0xe1   : > { %257 = vst [vmem:[%s160_s7 + $0x8] sm:$0xff] %v253_v15  ;;  %v254_v18 = vmax.f32 %v248_v16, 0.0  ;;  %v250_v19 = vadd.f32 %v249_v17, %v182_v13  ;;  %266 = sbr.rel (!%p458_p4) target bundleno = 238 (0xee), region = 36 }
  0xe3   : > { %258 = vst [vmem:[%s160_s7 + $0x10] sm:$0xff] %v254_v18  ;;  %v255_v20 = vmax.f32 %v250_v19, 0.0 }
  0xe5   : > { %259 = vst [vmem:[%s160_s7 + $0x18] sm:$0xff] %v255_v20 }
  0xe6   : > { %v282_v21 = vld [vmem:[%s160_s7] sm:$0xff] }
  0xe7   : > { %283 = vst [vmem:[%s269_s11] sm:$0xff] %v282_v21 }
  0xe8   : > { %v284_v22 = vld [vmem:[%s160_s7 + $0x8] sm:$0xff] }
  0xe9   : > { %285 = vst [vmem:[%s269_s11 + $0x8] sm:$0xff] %v284_v22 }
  0xea   : > { %v286_v23 = vld [vmem:[%s160_s7 + $0x10] sm:$0xff] }
  0xeb   : > { %287 = vst [vmem:[%s269_s11 + $0x20] sm:$0xff] %v286_v23 }
  0xec   : > { %v288_v24 = vld [vmem:[%s160_s7 + $0x18] sm:$0xff] }
  0xed   : > { %289 = vst [vmem:[%s269_s11 + $0x28] sm:$0xff] %v288_v24 }
  0xee PF: > { %p10_p8 = scmp.ge.s32.totalorder %s448_s16, 4   ;;  %s497_s12 = smov %s406_s13 }
  0xef   : > { %s498_s13 = smov %s456_s19  ;;  %s499_s14 = smov %s448_s16 }
  0xf0   :  { %12 = sbr.rel (!%p10_p8) target bundleno = 2 (0x2), region = 85 }

// kernel: _lambda_.8
= control target key start
LH: loop header
LB: loop body
LE: loop exit
PB: predicated region body
PF: predicated region fallthrough
CT: control target
= control target key end

     0   :  { %s543_s10 = smov 127   ;;  %s544_s11 = smov 126   ;;  %vm520_vm0 = vcmask 130048   ;;  %s1267_s0 = inlined_call_operand.vmem [shape: f32[8,18,18], index: 0, kind: input, shape index: {}]   ;;  %s1268_s1 = inlined_call_operand.vmem [shape: f32[8,16,16], index: 1, kind: output, shape index: {}]  }
   0x1   :  { %v558_v0 = vld [vmem:[%s1267_s0 + $0x18] sm:$0xff]  ;;  %v563_v1 = vld [vmem:[%s1267_s0] sm:$0xff]  ;;  %v577_v3 = vld [vmem:[%s1267_s0 + $0x8] sm:$0xff] }
   0x2   :  { %44 = vrot.lane.b32.xlu1 %v558_v0, %s543_s10  ;;  %40 = vrot.lane.b32.xlu0 %v563_v1, %s543_s10  ;;  %v572_v2 = vld [vmem:[%s1267_s0 + $0x20] sm:$0xff]  ;;  %v586_v4 = vld [vmem:[%s1267_s0 + $0x38] sm:$0xff] }
   0x3   :  { %v591_v5 = vld [vmem:[%s1267_s0 + $0x30] sm:$0xff]  ;;  %v605_v7 = vld [vmem:[%s1267_s0 + $0x48] sm:$0xff]  ;;  %v619_v9 = vld [vmem:[%s1267_s0 + $0x60] sm:$0xff] }
   0x4   :  { %v600_v6 = vld [vmem:[%s1267_s0 + $0x50] sm:$0xff]  ;;  %v614_v8 = vld [vmem:[%s1267_s0 + $0x68] sm:$0xff]  ;;  %v628_v10 = vld [vmem:[%s1267_s0 + $0x80] sm:$0xff] }
   0x5   :  { %v633_v11 = vld [vmem:[%s1267_s0 + $0x78] sm:$0xff]  ;;  %v647_v13 = vld [vmem:[%s1267_s0 + $0x90] sm:$0xff]  ;;  %v661_v15 = vld [vmem:[%s1267_s0 + $0xa8] sm:$0xff] }
   0x6   :  { %46 = vrot.lane.b32.xlu1 %v572_v2, %s543_s10  ;;  %42 = vrot.lane.b32.xlu0 %v577_v3, %s543_s10  ;;  %v642_v12 = vld [vmem:[%s1267_s0 + $0x98] sm:$0xff]  ;;  %v656_v14 = vld [vmem:[%s1267_s0 + $0xb0] sm:$0xff] }
   0x7   :  { %v702_v16 = vld [vmem:[%s1267_s0 + $0x9] sm:$0xff]  ;;  %v707_v17 = vld [vmem:[%s1267_s0 + $0x1] sm:$0xff]  ;;  %v721_v19 = vld [vmem:[%s1267_s0 + $0x19] sm:$0xff] }
   0x8   :  { %v716_v18 = vld [vmem:[%s1267_s0 + $0x21] sm:$0xff]  ;;  %v730_v20 = vld [vmem:[%s1267_s0 + $0x39] sm:$0xff]  ;;  %v735_v21 = vld [vmem:[%s1267_s0 + $0x31] sm:$0xff] }
   0x9   :  { %v744_v22 = vld [vmem:[%s1267_s0 + $0x51] sm:$0xff]  ;;  %v749_v23 = vld [vmem:[%s1267_s0 + $0x49] sm:$0xff]  ;;  %v763_v25 = vld [vmem:[%s1267_s0 + $0x61] sm:$0xff] }
   0xa   :  { %50 = vrot.lane.b32.xlu1 %v586_v4, %s543_s10  ;;  %48 = vrot.lane.b32.xlu0 %v591_v5, %s543_s10  ;;  %v758_v24 = vld [vmem:[%s1267_s0 + $0x69] sm:$0xff]  ;;  %v772_v26 = vld [vmem:[%s1267_s0 + $0x81] sm:$0xff] }
   0xb   :  { %v777_v27 = vld [vmem:[%s1267_s0 + $0x79] sm:$0xff]  ;;  %v791_v29 = vld [vmem:[%s1267_s0 + $0x91] sm:$0xff]  ;;  %v805_v31 = vld [vmem:[%s1267_s0 + $0xa9] sm:$0xff] }
   0xc   :  { %v786_v28 = vld [vmem:[%s1267_s0 + $0x99] sm:$0xff]  ;;  %1275 = vst [vmem:[#allocation2_spill] sm:$0xff] %v791_v29  ;;  %v800_v30 = vld [vmem:[%s1267_s0 + $0xb1] sm:$0xff]  ;;  %1277 = vst [vmem:[#allocation4_spill] sm:$0xff] %v805_v31 }
   0xd   :  { %1276 = vst [vmem:[#allocation3_spill] sm:$0xff] %v800_v30  ;;  %v846_v38 = vld [vmem:[%s1267_s0 + $0xa] sm:$0xff]  ;;  %v851_v39 = vld [vmem:[%s1267_s0 + $0x2] sm:$0xff]  ;;  %v869_v43 = vld [vmem:[%s1267_s0 + $0x1a] sm:$0xff] }
   0xe   :  { %54 = vrot.lane.b32.xlu1 %v600_v6, %s543_s10  ;;  %52 = vrot.lane.b32.xlu0 %v605_v7, %s543_s10  ;;  %v864_v42 = vld [vmem:[%s1267_s0 + $0x22] sm:$0xff]  ;;  %v882_v46 = vld [vmem:[%s1267_s0 + $0x3a] sm:$0xff] }
   0xf   :  { %v887_v47 = vld [vmem:[%s1267_s0 + $0x32] sm:$0xff]  ;;  %v905_v51 = vld [vmem:[%s1267_s0 + $0x4a] sm:$0xff]  ;;  %v923_v55 = vld [vmem:[%s1267_s0 + $0x62] sm:$0xff] }
  0x10   :  { %v900_v50 = vld [vmem:[%s1267_s0 + $0x52] sm:$0xff]  ;;  %v918_v54 = vld [vmem:[%s1267_s0 + $0x6a] sm:$0xff]  ;;  %v938_v60 = vld [vmem:[%s1267_s0 + $0x82] sm:$0xff] }
  0x11   :  { %v943_v61 = vld [vmem:[%s1267_s0 + $0x7a] sm:$0xff] }
  0x12   :  { %58 = vrot.lane.b32.xlu1 %v614_v8, %s543_s10  ;;  %56 = vrot.lane.b32.xlu0 %v619_v9, %s543_s10 }
  0x16   :  { %62 = vrot.lane.b32.xlu1 %v628_v10, %s543_s10  ;;  %60 = vrot.lane.b32.xlu0 %v633_v11, %s543_s10 }
  0x1a   :  { %66 = vrot.lane.b32.xlu1 %v642_v12, %s543_s10  ;;  %64 = vrot.lane.b32.xlu0 %v647_v13, %s543_s10 }
  0x1e   :  { %70 = vrot.lane.b32.xlu1 %v656_v14, %s543_s10  ;;  %68 = vrot.lane.b32.xlu0 %v661_v15, %s543_s10 }
  0x22   :  { %106 = vrot.lane.b32.xlu1 %v577_v3, %s544_s11  ;;  %104 = vrot.lane.b32.xlu0 %v563_v1, %s544_s11 }
  0x26   :  { %110 = vrot.lane.b32.xlu1 %v572_v2, %s544_s11  ;;  %108 = vrot.lane.b32.xlu0 %v558_v0, %s544_s11 }
  0x2a   :  { %114 = vrot.lane.b32.xlu1 %v586_v4, %s544_s11  ;;  %112 = vrot.lane.b32.xlu0 %v591_v5, %s544_s11 }
  0x2e   :  { %118 = vrot.lane.b32.xlu1 %v600_v6, %s544_s11  ;;  %116 = vrot.lane.b32.xlu0 %v605_v7, %s544_s11 }
  0x32   :  { %122 = vrot.lane.b32.xlu1 %v614_v8, %s544_s11  ;;  %120 = vrot.lane.b32.xlu0 %v619_v9, %s544_s11 }
  0x36   :  { %126 = vrot.lane.b32.xlu1 %v628_v10, %s544_s11  ;;  %124 = vrot.lane.b32.xlu0 %v633_v11, %s544_s11 }
  0x3a   :  { %130 = vrot.lane.b32.xlu1 %v642_v12, %s544_s11  ;;  %128 = vrot.lane.b32.xlu0 %v647_v13, %s544_s11 }
  0x3e   :  { %134 = vrot.lane.b32.xlu1 %v656_v14, %s544_s11  ;;  %132 = vrot.lane.b32.xlu0 %v661_v15, %s544_s11 }
  0x42   :  { %218 = vrot.lane.b32.xlu1 %v702_v16, %s543_s10  ;;  %216 = vrot.lane.b32.xlu0 %v707_v17, %s543_s10 }
  0x46   :  { %222 = vrot.lane.b32.xlu1 %v716_v18, %s543_s10  ;;  %220 = vrot.lane.b32.xlu0 %v721_v19, %s543_s10 }
  0x4a   :  { %226 = vrot.lane.b32.xlu1 %v730_v20, %s543_s10  ;;  %224 = vrot.lane.b32.xlu0 %v735_v21, %s543_s10 }
  0x4e   :  { %230 = vrot.lane.b32.xlu1 %v744_v22, %s543_s10  ;;  %228 = vrot.lane.b32.xlu0 %v749_v23, %s543_s10 }
  0x52   :  { %234 = vrot.lane.b32.xlu1 %v758_v24, %s543_s10  ;;  %232 = vrot.lane.b32.xlu0 %v763_v25, %s543_s10 }
  0x56   :  { %238 = vrot.lane.b32.xlu1 %v772_v26, %s543_s10  ;;  %236 = vrot.lane.b32.xlu0 %v777_v27, %s543_s10 }
  0x5a   :  { %242 = vrot.lane.b32.xlu1 %v786_v28, %s543_s10  ;;  %240 = vrot.lane.b32.xlu0 %v791_v29, %s543_s10 }
  0x5e   :  { %246 = vrot.lane.b32.xlu1 %v800_v30, %s543_s10  ;;  %244 = vrot.lane.b32.xlu0 %v805_v31, %s543_s10 }
  0x62   :  { %282 = vrot.lane.b32.xlu1 %v702_v16, %s544_s11  ;;  %280 = vrot.lane.b32.xlu0 %v707_v17, %s544_s11 }
  0x66   :  { %286 = vrot.lane.b32.xlu1 %v716_v18, %s544_s11  ;;  %284 = vrot.lane.b32.xlu0 %v721_v19, %s544_s11 }
  0x6a   :  { %290 = vrot.lane.b32.xlu1 %v730_v20, %s544_s11  ;;  %288 = vrot.lane.b32.xlu0 %v735_v21, %s544_s11 }
  0x6e   :  { %294 = vrot.lane.b32.xlu1 %v744_v22, %s544_s11  ;;  %292 = vrot.lane.b32.xlu0 %v749_v23, %s544_s11 }
  0x72   :  { %298 = vrot.lane.b32.xlu1 %v758_v24, %s544_s11  ;;  %296 = vrot.lane.b32.xlu0 %v763_v25, %s544_s11 }
  0x74   :  { %v45_v32 = vpop.permute.xlu1 %44  ;;  %v41_v33 = vpop.permute.xlu0 %40 }
  0x75   :  { %v88_v58 = vmax.f32 %v563_v1, %v41_v33  ;;  %v90_v1 = vmax.f32 %v558_v0, %v45_v32  ;;  %v958_v33 = vld [vmem:[%s1267_s0 + $0x9a] sm:$0xff]  ;;  %v978_v32 = vld [vmem:[%s1267_s0 + $0xb2] sm:$0xff] }
  0x76   :  { %302 = vrot.lane.b32.xlu1 %v772_v26, %s544_s11  ;;  %300 = vrot.lane.b32.xlu0 %v777_v27, %s544_s11  ;;  %1279 = vst [vmem:[#allocation6_spill] sm:$0xff] %v978_v32 }
  0x78   :  { %v47_v34 = vpop.permute.xlu1 %46  ;;  %v43_v35 = vpop.permute.xlu0 %42 }
  0x79   :  { %v89_v59 = vmax.f32 %v577_v3, %v43_v35  ;;  %v91_v3 = vmax.f32 %v572_v2, %v47_v34  ;;  %v963_v35 = vld [vmem:[%s1267_s0 + $0x92] sm:$0xff]  ;;  %v983_v34 = vld [vmem:[%s1267_s0 + $0xaa] sm:$0xff] }
  0x7a   :  { %306 = vrot.lane.b32.xlu1 %v786_v28, %s544_s11  ;;  %304 = vrot.lane.b32.xlu0 %v791_v29, %s544_s11  ;;  %1278 = vst [vmem:[#allocation5_spill] sm:$0xff] %v963_v35  ;;  %1280 = vst [vmem:[#allocation7_spill] sm:$0xff] %v983_v34 }
  0x7c   :  { %v51_v36 = vpop.permute.xlu1 %50  ;;  %v49_v37 = vpop.permute.xlu0 %48 }
  0x7d   :  { %v93_v0 = vmax.f32 %v586_v4, %v51_v36  ;;  %v92_v2 = vmax.f32 %v591_v5, %v49_v37 }
  0x7e   :  { %310 = vrot.lane.b32.xlu1 %v800_v30, %s544_s11  ;;  %308 = vrot.lane.b32.xlu0 %v805_v31, %s544_s11 }
  0x80   :  { %v853_v40 = vpop.permute.xlu1 %54  ;;  %v855_v41 = vpop.permute.xlu0 %52 }
  0x81   :  { %v95_v4 = vmax.f32 %v600_v6, %v853_v40  ;;  %v94_v5 = vmax.f32 %v605_v7, %v855_v41 }
  0x82   :  { %394 = vrot.lane.b32.xlu1 %v846_v38, %s543_s10  ;;  %392 = vrot.lane.b32.xlu0 %v851_v39, %s543_s10 }
  0x84   :  { %v871_v44 = vpop.permute.xlu1 %58  ;;  %v873_v45 = vpop.permute.xlu0 %56 }
  0x85   :  { %v96_v6 = vmax.f32 %v619_v9, %v873_v45 }
  0x86   :  { %398 = vrot.lane.b32.xlu1 %v864_v42, %s543_s10  ;;  %396 = vrot.lane.b32.xlu0 %v869_v43, %s543_s10 }
  0x88   :  { %v889_v48 = vpop.permute.xlu1 %62  ;;  %v891_v49 = vpop.permute.xlu0 %60 }
  0x8a   :  { %402 = vrot.lane.b32.xlu1 %v882_v46, %s543_s10  ;;  %400 = vrot.lane.b32.xlu0 %v887_v47, %s543_s10 }
  0x8c   :  { %v907_v52 = vpop.permute.xlu1 %66  ;;  %v909_v53 = vpop.permute.xlu0 %64 }
  0x8e   :  { %406 = vrot.lane.b32.xlu1 %v900_v50, %s543_s10  ;;  %404 = vrot.lane.b32.xlu0 %v905_v51, %s543_s10 }
  0x90   :  { %v925_v56 = vpop.permute.xlu1 %70  ;;  %v927_v57 = vpop.permute.xlu0 %68 }
  0x92   :  { %410 = vrot.lane.b32.xlu1 %v918_v54, %s543_s10  ;;  %408 = vrot.lane.b32.xlu0 %v923_v55, %s543_s10 }
  0x94   :  { %v107_v62 = vpop.permute.xlu1 %106  ;;  %v105_v63 = vpop.permute.xlu0 %104 }
  0x95   :  { %v945_v31 = vmax.f32 %v89_v59, %v107_v62  ;;  %v947_v30 = vmax.f32 %v88_v58, %v105_v63 }
  0x96   :  { %414 = vrot.lane.b32.xlu1 %v938_v60, %s543_s10  ;;  %412 = vrot.lane.b32.xlu0 %v943_v61, %s543_s10 }
  0x98   :  { %v111_v58 = vpop.permute.xlu1 %110  ;;  %v109_v59 = vpop.permute.xlu0 %108 }
  0x99   :  { %v965_v62 = vmax.f32 %v91_v3, %v111_v58  ;;  %v967_v63 = vmax.f32 %v90_v1, %v109_v59 }
  0x9a   :  { %418 = vrot.lane.b32.xlu1 %v958_v33, %s543_s10  ;;  %416 = vrot.lane.b32.xlu0 %v963_v35, %s543_s10 }
  0x9c   :  { %v115_v1 = vpop.permute.xlu1 %114  ;;  %v113_v3 = vpop.permute.xlu0 %112 }
  0x9d   :  { %v985_v58 = vmax.f32 %v93_v0, %v115_v1  ;;  %v987_v59 = vmax.f32 %v92_v2, %v113_v3  ;;  %v97_v2 = vmax.f32 %v614_v8, %v871_v44  ;;  %v99_v3 = vmax.f32 %v628_v10, %v889_v48 }
  0x9e   :  { %422 = vrot.lane.b32.xlu1 %v978_v32, %s543_s10  ;;  %420 = vrot.lane.b32.xlu0 %v983_v34, %s543_s10  ;;  %v98_v8 = vmax.f32 %v633_v11, %v891_v49  ;;  %v103_v49 = vmax.f32 %v656_v14, %v925_v56 }
  0xa0   :  { %v119_v36 = vpop.permute.xlu1 %118  ;;  %v117_v37 = vpop.permute.xlu0 %116 }
  0xa1   :  { %v997_v29 = vmax.f32 %v95_v4, %v119_v36  ;;  %v999_v0 = vmax.f32 %v94_v5, %v117_v37  ;;  %v101_v5 = vmax.f32 %v642_v12, %v907_v52  ;;  %v100_v36 = vmax.f32 %v647_v13, %v909_v53 }
  0xa2   :  { %458 = vrot.lane.b32.xlu1 %v846_v38, %s544_s11  ;;  %456 = vrot.lane.b32.xlu0 %v851_v39, %s544_s11  ;;  %v185_v53 = vmax.f32 %v945_v31, %v702_v16  ;;  %v186_v16 = vmax.f32 %v967_v63, %v721_v19 }
  0xa4   :  { %v123_v40 = vpop.permute.xlu1 %122  ;;  %v121_v7 = vpop.permute.xlu0 %120 }
  0xa5   :  { %v1009_v41 = vmax.f32 %v97_v2, %v123_v40  ;;  %v1011_v1 = vmax.f32 %v96_v6, %v121_v7  ;;  %v102_v2 = vmax.f32 %v661_v15, %v927_v57  ;;  %v184_v40 = vmax.f32 %v947_v30, %v707_v17 }
  0xa6   :  { %462 = vrot.lane.b32.xlu1 %v864_v42, %s544_s11  ;;  %460 = vrot.lane.b32.xlu0 %v869_v43, %s544_s11  ;;  %v187_v57 = vmax.f32 %v965_v62, %v716_v18  ;;  %v188_v18 = vmax.f32 %v987_v59, %v735_v21 }
  0xa8   :  { %v127_v44 = vpop.permute.xlu1 %126  ;;  %v125_v9 = vpop.permute.xlu0 %124 }
  0xa9   :  { %v163_v45 = vmax.f32 %v99_v3, %v127_v44  ;;  %v162_v4 = vmax.f32 %v98_v8, %v125_v9  ;;  %v189_v8 = vmax.f32 %v985_v58, %v730_v20  ;;  %v191_v9 = vmax.f32 %v997_v29, %v744_v22 }
  0xaa   :  { %466 = vrot.lane.b32.xlu1 %v882_v46, %s544_s11  ;;  %464 = vrot.lane.b32.xlu0 %v887_v47, %s544_s11  ;;  %v190_v20 = vmax.f32 %v999_v0, %v749_v23 }
  0xab   :  { %v195_v23 = vmax.f32 %v163_v45, %v772_v26  ;;  %v194_v29 = vmax.f32 %v162_v4, %v777_v27  ;;  %v1283_v45 = vld [vmem:[#allocation4_spill] sm:$0xff] }
  0xac   :  { %v131_v10 = vpop.permute.xlu1 %130  ;;  %v129_v48 = vpop.permute.xlu0 %128 }
  0xad   :  { %v165_v37 = vmax.f32 %v101_v5, %v131_v10  ;;  %v164_v11 = vmax.f32 %v100_v36, %v129_v48  ;;  %v193_v36 = vmax.f32 %v1009_v41, %v758_v24  ;;  %v192_v10 = vmax.f32 %v1011_v1, %v763_v25  ;;  %v1281_v41 = vld [vmem:[#allocation2_spill] sm:$0xff] }
  0xae   :  { %470 = vrot.lane.b32.xlu1 %v900_v50, %s544_s11  ;;  %468 = vrot.lane.b32.xlu0 %v905_v51, %s544_s11 }
  0xaf   :  { %v197_v24 = vmax.f32 %v165_v37, %v786_v28  ;;  %v196_v25 = vmax.f32 %v164_v11, %v1281_v41 }
  0xb0   :  { %v135_v12 = vpop.permute.xlu1 %134  ;;  %v133_v52 = vpop.permute.xlu0 %132 }
  0xb1   :  { %v167_v6 = vmax.f32 %v103_v49, %v135_v12  ;;  %v166_v13 = vmax.f32 %v102_v2, %v133_v52 }
  0xb2   :  { %474 = vrot.lane.b32.xlu1 %v918_v54, %s544_s11  ;;  %472 = vrot.lane.b32.xlu0 %v923_v55, %s544_s11 }
  0xb3   :  { %v198_v27 = vmax.f32 %v166_v13, %v1283_v45 }
  0xb4   :  { %v219_v14 = vpop.permute.xlu1 %218  ;;  %v217_v56 = vpop.permute.xlu0 %216 }
  0xb5   :  { %v1045_v7 = vmax.f32 %v185_v53, %v219_v14  ;;  %v1047_v15 = vmax.f32 %v184_v40, %v217_v56 }
  0xb6   :  { %478 = vrot.lane.b32.xlu1 %v938_v60, %s544_s11  ;;  %476 = vrot.lane.b32.xlu0 %v943_v61, %s544_s11 }
  0xb8   :  { %v223_v31 = vpop.permute.xlu1 %222  ;;  %v221_v17 = vpop.permute.xlu0 %220 }
  0xb9   :  { %v1057_v30 = vmax.f32 %v187_v57, %v223_v31  ;;  %v1059_v3 = vmax.f32 %v186_v16, %v221_v17  ;;  %v1282_v57 = vld [vmem:[#allocation3_spill] sm:$0xff] }
  0xba   :  { %482 = vrot.lane.b32.xlu1 %v958_v33, %s544_s11  ;;  %480 = vrot.lane.b32.xlu0 %v963_v35, %s544_s11  ;;  %v199_v26 = vmax.f32 %v167_v6, %v1282_v57 }
  0xbc   :  { %v227_v62 = vpop.permute.xlu1 %226  ;;  %v225_v19 = vpop.permute.xlu0 %224 }
  0xbd   :  { %v1069_v63 = vmax.f32 %v189_v8, %v227_v62  ;;  %v1071_v44 = vmax.f32 %v188_v18, %v225_v19 }
  0xbe   :  { %486 = vrot.lane.b32.xlu1 %v978_v32, %s544_s11  ;;  %484 = vrot.lane.b32.xlu0 %v983_v34, %s544_s11 }
  0xc0   :  { %v231_v58 = vpop.permute.xlu1 %230  ;;  %v229_v21 = vpop.permute.xlu0 %228 }
  0xc1   :  { %v1081_v59 = vmax.f32 %v191_v9, %v231_v58  ;;  %v1083_v5 = vmax.f32 %v190_v20, %v229_v21 }
  0xc4   :  { %v235_v48 = vpop.permute.xlu1 %234  ;;  %v233_v49 = vpop.permute.xlu0 %232 }
  0xc5   :  { %v1089_v2 = vmax.f32 %v193_v36, %v235_v48  ;;  %v1091_v22 = vmax.f32 %v192_v10, %v233_v49 }
  0xc8   :  { %v239_v0 = vpop.permute.xlu1 %238  ;;  %v237_v12 = vpop.permute.xlu0 %236 }
  0xc9   :  { %v1095_v52 = vmax.f32 %v195_v23, %v239_v0  ;;  %v1097_v53 = vmax.f32 %v194_v29, %v237_v12 }
  0xcc   :  { %v243_v1 = vpop.permute.xlu1 %242  ;;  %v241_v40 = vpop.permute.xlu0 %240 }
  0xcd   :  { %v1101_v14 = vmax.f32 %v197_v24, %v243_v1  ;;  %v1103_v56 = vmax.f32 %v196_v25, %v241_v40 }
  0xd0   :  { %v247_v4 = vpop.permute.xlu1 %246  ;;  %v245_v16 = vpop.permute.xlu0 %244 }
  0xd1   :  { %v1107_v31 = vmax.f32 %v199_v26, %v247_v4  ;;  %v1109_v17 = vmax.f32 %v198_v27, %v245_v16 }
  0xd3   :  { %1284 = vst [vmem:[#allocation2_spill] sm:$0xff] %v1107_v31  ;;  %1285 = vst [vmem:[#allocation3_spill] sm:$0xff] %v1109_v17 }
  0xd4   :  { %v283_v8 = vpop.permute.xlu1 %282  ;;  %v281_v28 = vpop.permute.xlu0 %280 }
  0xd5   :  { %v329_v4 = vmax.f32 %v1045_v7, %v283_v8  ;;  %v328_v16 = vmax.f32 %v1047_v15, %v281_v28 }
  0xd7   :  { %v361_v31 = vmax.f32 %v329_v4, %v846_v38 }
  0xd8   :  { %v287_v37 = vpop.permute.xlu1 %286  ;;  %v285_v11 = vpop.permute.xlu0 %284 }
  0xd9   :  { %v331_v17 = vmax.f32 %v1057_v30, %v287_v37 }
  0xdb   :  { %v363_v28 = vmax.f32 %v331_v17, %v864_v42 }
  0xdc   :  { %v291_v18 = vpop.permute.xlu1 %290  ;;  %v289_v62 = vpop.permute.xlu0 %288 }
  0xdd   :  { %v332_v7 = vmax.f32 %v1071_v44, %v289_v62 }
  0xe0   :  { %v1111_v19 = vpop.permute.xlu1 %294  ;;  %v1113_v9 = vpop.permute.xlu0 %292 }
  0xe4   :  { %v1115_v20 = vpop.permute.xlu1 %298  ;;  %v1117_v6 = vpop.permute.xlu0 %296 }
  0xe8   :  { %v1119_v13 = vpop.permute.xlu1 %302  ;;  %v1121_v58 = vpop.permute.xlu0 %300 }
  0xec   :  { %v1123_v21 = vpop.permute.xlu1 %306  ;;  %v1125_v36 = vpop.permute.xlu0 %304 }
  0xf0   :  { %v1127_v10 = vpop.permute.xlu1 %310  ;;  %v1129_v48 = vpop.permute.xlu0 %308 }
  0xf1   :  { %1286 = vst [vmem:[#allocation4_spill] sm:$0xff] %v1127_v10  ;;  %1287 = vst [vmem:[#allocation8_spill] sm:$0xff] %v1129_v48  ;;  %v330_v48 = vmax.f32 %v1059_v3, %v285_v11  ;;  %v360_v10 = vmax.f32 %v328_v16, %v851_v39  ;;  %v364_v39 = vmax.f32 %v332_v7, %v887_v47 }
  0xf2   :  { %v336_v47 = vmax.f32 %v1091_v22, %v1117_v6  ;;  %v338_v6 = vmax.f32 %v1097_v53, %v1121_v58 }
  0xf4   :  { %v395_v49 = vpop.permute.xlu1 %394  ;;  %v393_v23 = vpop.permute.xlu0 %392  ;;  %v370_v58 = vmax.f32 %v338_v6, %v943_v61 }
  0xf5   :  { %v441_v35 = vmax.f32 %v361_v31, %v395_v49 }
  0xf8   :  { %v399_v29 = vpop.permute.xlu1 %398  ;;  %v397_v0 = vpop.permute.xlu0 %396 }
  0xf9   :  { %v443_v3 = vmax.f32 %v363_v28, %v399_v29 }
  0xfc   :  { %v403_v12 = vpop.permute.xlu1 %402  ;;  %v401_v24 = vpop.permute.xlu0 %400 }
  0xfd   :  { %v444_v17 = vmax.f32 %v364_v39, %v401_v24 }
 0x100   :  { %v1131_v41 = vpop.permute.xlu1 %406  ;;  %v1133_v25 = vpop.permute.xlu0 %404 }
 0x104   :  { %v1135_v1 = vpop.permute.xlu1 %410  ;;  %v1137_v40 = vpop.permute.xlu0 %408 }
 0x108   :  { %v1139_v57 = vpop.permute.xlu1 %414  ;;  %v1141_v26 = vpop.permute.xlu0 %412 }
 0x10c   :  { %v1143_v45 = vpop.permute.xlu1 %418  ;;  %v1145_v27 = vpop.permute.xlu0 %416 }
 0x10d   :  { %1288 = vst [vmem:[#allocation9_spill] sm:$0xff] %v1143_v45  ;;  %1289 = vst [vmem:[#allocation10_spill] sm:$0xff] %v1145_v27  ;;  %v440_v45 = vmax.f32 %v360_v10, %v393_v23  ;;  %v333_v27 = vmax.f32 %v1069_v63, %v291_v18 }
 0x10f   :  { %v365_v38 = vmax.f32 %v333_v27, %v882_v46  ;;  %v337_v46 = vmax.f32 %v1089_v2, %v1115_v20  ;;  %v339_v20 = vmax.f32 %v1095_v52, %v1119_v13 }
 0x110   :  { %v1149_v34 = vpop.permute.xlu1 %422  ;;  %v1151_v32 = vpop.permute.xlu0 %420 }
 0x111   :  { %1290 = vst [vmem:[#allocation11_spill] sm:$0xff] %v1151_v32  ;;  %v362_v32 = vmax.f32 %v330_v48, %v869_v43  ;;  %v445_v31 = vmax.f32 %v365_v38, %v403_v12  ;;  %v371_v13 = vmax.f32 %v339_v20, %v938_v60 }
 0x113   :  { %v442_v11 = vmax.f32 %v362_v32, %v397_v0  ;;  %v334_v32 = vmax.f32 %v1083_v5, %v1113_v9 }
 0x114   :  { %v459_v15 = vpop.permute.xlu1 %458  ;;  %v457_v8 = vpop.permute.xlu0 %456  ;;  %v1296_v16 = vld [vmem:[#allocation9_spill] sm:$0xff] }
 0x115   :  { %v505_v30 = vmax.f32 %v441_v35, %v459_v15  ;;  %v504_v37 = vmax.f32 %v440_v45, %v457_v8  ;;  %v335_v35 = vmax.f32 %v1081_v59, %v1111_v19  ;;  %v366_v62 = vmax.f32 %v334_v32, %v905_v51  ;;  %v1297_v15 = vld [vmem:[#allocation10_spill] sm:$0xff] }
 0x116   :  { %v368_v51 = vmax.f32 %v336_v47, %v923_v55  ;;  %v340_v55 = vmax.f32 %v1103_v56, %v1125_v36  ;;  %v1292_v36 = vld [vmem:[#allocation4_spill] sm:$0xff] }
 0x117   :  { %522 = vst.msk [vmem:[%s1268_s1 + $0x8] sm:$0xff] %vm520_vm0, %v505_v30  ;;  %521 = vst.msk [vmem:[%s1268_s1] sm:$0xff] %vm520_vm0, %v504_v37  ;;  %v367_v18 = vmax.f32 %v335_v35, %v900_v50  ;;  %v446_v48 = vmax.f32 %v366_v62, %v1133_v25  ;;  %v369_v50 = vmax.f32 %v337_v46, %v918_v54  ;;  %v1298_v30 = vld [vmem:[#allocation6_spill] sm:$0xff] }
 0x118   :  { %v463_v42 = vpop.permute.xlu1 %462  ;;  %v461_v43 = vpop.permute.xlu0 %460  ;;  %v448_v0 = vmax.f32 %v368_v51, %v1137_v40  ;;  %v341_v54 = vmax.f32 %v1101_v14, %v1123_v21  ;;  %v450_v25 = vmax.f32 %v370_v58, %v1141_v26  ;;  %v1291_v14 = vld [vmem:[#allocation5_spill] sm:$0xff]  ;;  %v1295_v26 = vld [vmem:[#allocation3_spill] sm:$0xff] }
 0x119   :  { %v507_v63 = vmax.f32 %v443_v3, %v463_v42  ;;  %v506_v44 = vmax.f32 %v442_v11, %v461_v43  ;;  %v447_v10 = vmax.f32 %v367_v18, %v1131_v41  ;;  %v449_v29 = vmax.f32 %v369_v50, %v1135_v1  ;;  %v1293_v1 = vld [vmem:[#allocation2_spill] sm:$0xff]  ;;  %v1299_v3 = vld [vmem:[#allocation7_spill] sm:$0xff] }
 0x11a   :  { %v451_v41 = vmax.f32 %v371_v13, %v1139_v57  ;;  %v373_v60 = vmax.f32 %v341_v54, %v958_v33  ;;  %v372_v61 = vmax.f32 %v340_v55, %v1291_v14  ;;  %v343_v40 = vmax.f32 %v1293_v1, %v1292_v36  ;;  %v1294_v57 = vld [vmem:[#allocation8_spill] sm:$0xff]  ;;  %v1300_v43 = vld [vmem:[#allocation11_spill] sm:$0xff] }
 0x11b   :  { %524 = vst.msk [vmem:[%s1268_s1 + $0x18] sm:$0xff] %vm520_vm0, %v507_v63  ;;  %523 = vst.msk [vmem:[%s1268_s1 + $0x10] sm:$0xff] %vm520_vm0, %v506_v44  ;;  %v342_v45 = vmax.f32 %v1295_v26, %v1294_v57 }
 0x11c   :  { %v467_v59 = vpop.permute.xlu1 %466  ;;  %v465_v5 = vpop.permute.xlu0 %464  ;;  %v453_v7 = vmax.f32 %v373_v60, %v1296_v16  ;;  %v452_v8 = vmax.f32 %v372_v61, %v1297_v15  ;;  %v375_v37 = vmax.f32 %v343_v40, %v1298_v30 }
 0x11d   :  { %v509_v19 = vmax.f32 %v445_v31, %v467_v59  ;;  %v508_v9 = vmax.f32 %v444_v17, %v465_v5  ;;  %v374_v11 = vmax.f32 %v342_v45, %v1299_v3 }
 0x11e   :  { %v455_v42 = vmax.f32 %v375_v37, %v1149_v34 }
 0x11f   :  { %526 = vst.msk [vmem:[%s1268_s1 + $0x28] sm:$0xff] %vm520_vm0, %v509_v19  ;;  %525 = vst.msk [vmem:[%s1268_s1 + $0x20] sm:$0xff] %vm520_vm0, %v508_v9  ;;  %v454_v35 = vmax.f32 %v374_v11, %v1300_v43 }
 0x120   :  { %v471_v2 = vpop.permute.xlu1 %470  ;;  %v469_v22 = vpop.permute.xlu0 %468 }
 0x121   :  { %v511_v49 = vmax.f32 %v447_v10, %v471_v2  ;;  %v510_v23 = vmax.f32 %v446_v48, %v469_v22 }
 0x123   :  { %528 = vst.msk [vmem:[%s1268_s1 + $0x38] sm:$0xff] %vm520_vm0, %v511_v49  ;;  %527 = vst.msk [vmem:[%s1268_s1 + $0x30] sm:$0xff] %vm520_vm0, %v510_v23 }
 0x124   :  { %v475_v52 = vpop.permute.xlu1 %474  ;;  %v473_v53 = vpop.permute.xlu0 %472 }
 0x125   :  { %v513_v12 = vmax.f32 %v449_v29, %v475_v52  ;;  %v512_v24 = vmax.f32 %v448_v0, %v473_v53 }
 0x127   :  { %530 = vst.msk [vmem:[%s1268_s1 + $0x48] sm:$0xff] %vm520_vm0, %v513_v12  ;;  %529 = vst.msk [vmem:[%s1268_s1 + $0x40] sm:$0xff] %vm520_vm0, %v512_v24 }
 0x128   :  { %v479_v56 = vpop.permute.xlu1 %478  ;;  %v477_v21 = vpop.permute.xlu0 %476 }
 0x129   :  { %v515_v27 = vmax.f32 %v451_v41, %v479_v56  ;;  %v514_v4 = vmax.f32 %v450_v25, %v477_v21 }
 0x12b   :  { %532 = vst.msk [vmem:[%s1268_s1 + $0x58] sm:$0xff] %vm520_vm0, %v515_v27  ;;  %531 = vst.msk [vmem:[%s1268_s1 + $0x50] sm:$0xff] %vm520_vm0, %v514_v4 }
 0x12c   :  { %v483_v33 = vpop.permute.xlu1 %482  ;;  %v481_v28 = vpop.permute.xlu0 %480 }
 0x12d   :  { %v517_v38 = vmax.f32 %v453_v7, %v483_v33  ;;  %v516_v39 = vmax.f32 %v452_v8, %v481_v28 }
 0x12f   :  { %534 = vst.msk [vmem:[%s1268_s1 + $0x68] sm:$0xff] %vm520_vm0, %v517_v38  ;;  %533 = vst.msk [vmem:[%s1268_s1 + $0x60] sm:$0xff] %vm520_vm0, %v516_v39 }
 0x130   :  { %v487_v32 = vpop.permute.xlu1 %486  ;;  %v485_v63 = vpop.permute.xlu0 %484 }
 0x131   :  { %v519_v44 = vmax.f32 %v455_v42, %v487_v32  ;;  %v518_v31 = vmax.f32 %v454_v35, %v485_v63 }
 0x133   :  { %536 = vst.msk [vmem:[%s1268_s1 + $0x78] sm:$0xff] %vm520_vm0, %v519_v44  ;;  %535 = vst.msk [vmem:[%s1268_s1 + $0x70] sm:$0xff] %vm520_vm0, %v518_v31 }

// kernel: _lambda_.9
= control target key start
LH: loop header
LB: loop body
LE: loop exit
PB: predicated region body
PF: predicated region fallthrough
CT: control target
= control target key end

     0   :  { %s357_s12 = smov 0   ;;  %s380_s0 = inlined_call_operand.vmem [shape: bf16[8,4], index: 0, kind: input, shape index: {}]   ;;  %s381_s1 = inlined_call_operand.vmem [shape: bf16[4,512], index: 1, kind: input, shape index: {}]   ;;  %s382_s2 = inlined_call_operand.vmem [shape: f32[8,1], index: 2, kind: input, shape index: {}]   ;;  %s383_s3 = inlined_call_operand.vmem [shape: f32[8,512], index: 3, kind: output, shape index: {}]  }
   0x1 LB: > { %s304_s13 = sadd.s32 4294967295, %s334_s12   ;;  %p308_p0 = scmp.ge.s32.totalorder %s334_s12, 1  ;;  %s334_s12 = sphi %s357_s12, %s13_s12  }
   0x2   : > { %p138_p1 = scmp.lt.s32.totalorder %s334_s12, 3 }
   0x4   : > { %p139_p2 = pnand %p308_p0, %p138_p1 }
   0x5   : > { %s309_s14 = sshll.u32 (!%p139_p2), %s304_s13, 1 }
   0x6   : > { %142 = sbr.rel (%p139_p2) target bundleno = 221 (0xdd), region = 32  ;;  %p163_p3 = scmp.lt.s32.totalorder (!%p139_p2), %s309_s14, 3 }
   0xb   : > { %v336_v0 = vmov 0   ;;  %v177_v1 = vld [vmem:[%s382_s2] sm:$0xff]  ;;  %s385_s14 = smov (!%p163_p3, %s309_s14), 3  ;;  %vm196_vm0 = vcmask 1041408   ;;  %vm192_vm1 = vcmask 31744  }
   0xc   : > { %235 = vmatprep.mubr.bf16.mxu0 %v336_v0  ;;  %327 = vset.pattern.permute.xlu0 %v336_v0  ;;  %s310_s17 = sshll.u32 %s385_s14, 1  ;;  %v175_v5 = vld [vmem:[%s380_s0] sm:$0xf]  ;;  %s312_s23 = sshll.u32 %s385_s14, 3 }
   0xd   : > { %180 = vperm.xlu0 %327, %v177_v1   ;;  %s166_s20 = scalar_lea.vmem %s381_s1, %s310_s17  ;;  %s172_s26 = scalar_lea.vmem %s383_s3, %s312_s23 }
   0xe   : > { %v313_v2 = vld.sshfl [vmem:[%s166_s20] sm:$0x33 pattern:$0x76325410] }
   0xf   : > { %v191_v3 = vcombine.high %v313_v2, %v313_v2  ;;  %v198_v4 = vsel %vm196_vm0, %v313_v2, 0 }
  0x11   : > { %314 = vmatprep.subr.msk.bf16.mxu0 %vm196_vm0, %v191_v3 }
  0x12   : > { %218 = vmatpush1.bf16.msra.mxu0 %v198_v4 }
  0x15   : > { %315 = vmatmul.mubr.msk.bf16.vlgmr.msra.gmra.mxu0 %vm192_vm1, %v175_v5 }
  0x88   : > { %v181_v6 = vpop.permute.xlu0 %180 }
  0xd5   : > { %v237_v7 = vpop.f32.mrf.mxu0 }
  0xd6   : > { %v238_v8 = vadd.f32 %v237_v7, %v181_v6 }
  0xd7   : > { %v239_v9 = vpop.f32.mrf.mxu0 }
  0xd8   : > { %v244_v10 = vmax.f32 %v238_v8, 0.0  ;;  %v240_v11 = vadd.f32 %v239_v9, %v181_v6 }
  0xd9   : > { %v241_v12 = vpop.f32.mrf.mxu0 }
  0xda   : > { %246 = vst [vmem:[%s172_s26] sm:$0xff] %v244_v10  ;;  %v245_v13 = vmax.f32 %v240_v11, 0.0 }
  0xdb   : > { %v242_v14 = vpop.f32.mrf.mxu0 }
  0xdc   : > { %247 = vst [vmem:[%s172_s26 + $0x8] sm:$0xff] %v245_v13 }
  0xdd PF: > { %s13_s12 = sadd.s32 1, %s334_s12  }
  0xde   : > { %p10_p4 = scmp.ge.s32.totalorder %s13_s12, 4  }
  0xe0   :  { %12 = sbr.rel (!%p10_p4) target bundleno = 1 (0x1), region = 62 }

// kernel: _lambda_.6
= control target key start
LH: loop header
LB: loop body
LE: loop exit
PB: predicated region body
PF: predicated region fallthrough
CT: control target
= control target key end

     0   :  { %s482_s12 = smov 0   ;;  %s484_s13 = smov 0   ;;  %s540_s0 = inlined_call_operand.vmem [shape: bf16[8,36], index: 0, kind: input, shape index: {}]   ;;  %s541_s1 = inlined_call_operand.vmem [shape: bf16[36,512], index: 1, kind: input, shape index: {}]   ;;  %s542_s2 = inlined_call_operand.vmem [shape: f32[8,1], index: 2, kind: input, shape index: {}]   ;;  %s543_s3 = inlined_call_operand.vmem [shape: f32[8,512], index: 3, kind: output, shape index: {}]  }
   0x1   :  { %s486_s14 = smov 0  }
   0x2 LB: > { %s381_s15 = sadd.s32 4294967295, %s459_s14   ;;  %s499_s16 = sadd.s32 1, %s459_s14   ;;  %s459_s14 = sphi %s486_s14, %s546_s14   ;;  %s455_s13 = sphi %s484_s13, %s545_s13   ;;  %s451_s12 = sphi %s482_s12, %s544_s12  }
   0x3   : > { %s38_s17 = ssub.s32 %s459_s14, %s499_s16  ;;  %s41_s18 = sadd.s32 1, %s455_s13 }
   0x4   : > { %p39_p0 = scmp.eq.s32.totalorder %s38_s17, 0  ;;  %p48_p1 = scmp.ne.s32.totalorder %s455_s13, %s451_s12 }
   0x5   : > { %p49_p2 = scmp.eq.s32.totalorder %s459_s14, 0  ;;  %p384_p4 = scmp.ge.s32.totalorder %s459_s14, 2 }
   0x6   : > { %s508_s19 = scalar_select %p39_p0, %s455_s13, %s41_s18  }
   0x7   : > { %p50_p3 = por %p49_p2, %p48_p1  ;;  %127 = sbr.rel (%p384_p4) target bundleno = 19 (0x13), region = 24 }
   0xc   : > { %130 = sbr.rel (!%p50_p3) target bundleno = 19 (0x13), region = 28  ;;  %s132_s20 = sand.u32 (%p50_p3), 1, %s455_s13  }
   0xd   : > { %s400_s21 = sshll.u32 (%p50_p3), %s459_s14, 3  ;;  %s401_s22 = smul.u32 (%p50_p3), 40, %s132_s20 }
   0xe   : > { %s137_s25 = scalar_lea.vmem (%p50_p3), %s541_s1, %s400_s21 }
   0xf   : > { %v174_v0 = vld [vmem:[%s137_s25] sm:$0xff] (%p50_p3)  ;;  %v176_v1 = vld [vmem:[%s137_s25 + $0x10] sm:$0xff] (%p50_p3)  ;;  %s134_s26 = scalar_lea.vmem (%p50_p3), [#allocation2], %s401_s22 }
  0x10   : > { %v178_v2 = vld [vmem:[%s137_s25 + $0x20] sm:$0xff] (%p50_p3)  ;;  %v180_v3 = vld [vmem:[%s137_s25 + $0x30] sm:$0xff] (%p50_p3)  ;;  %175 = vst [vmem:[%s134_s26] sm:$0xff] (%p50_p3), %v174_v0  ;;  %177 = vst [vmem:[%s134_s26 + $0x8] sm:$0xff] (%p50_p3), %v176_v1 }
  0x11   : > { %v182_v4 = vld [vmem:[%s137_s25 + $0x40] sm:$0xff]  ;;  %179 = vst [vmem:[%s134_s26 + $0x10] sm:$0xff] %v178_v2  ;;  %181 = vst [vmem:[%s134_s26 + $0x18] sm:$0xff] %v180_v3 }
  0x12   : > { %183 = vst [vmem:[%s134_s26 + $0x20] sm:$0xff] %v182_v4 }
  0x13 PF: > { %p387_p5 = scmp.ge.s32.totalorder %s459_s14, 1  ;;  %p188_p6 = scmp.lt.s32.totalorder %s459_s14, 3 }
  0x15   : > { %p189_p7 = pnand %p387_p5, %p188_p6 }
  0x16   : > { %s195_s27 = sand.u32 (!%p189_p7), 1, %s451_s12   ;;  %s388_s7 = sshll.u32 (!%p189_p7), %s381_s15, 1 }
  0x17   : > { %192 = sbr.rel (%p189_p7) target bundleno = 244 (0xf4), region = 66  ;;  %p220_p8 = scmp.lt.s32.totalorder (!%p189_p7), %s388_s7, 3 }
  0x18   : > { %s402_s28 = smul.u32 (!%p189_p7), 40, %s195_s27 }
  0x1a   : > { %s197_s4 = scalar_lea.vmem (!%p189_p7), [#allocation2], %s402_s28 }
  0x1c   : > { %v461_v5 = vmov 0   ;;  %v232_v6 = vld [vmem:[%s542_s2] sm:$0xff]  ;;  %vm267_vm0 = vcmask 1041408   ;;  %vm263_vm1 = vcmask 293888   ;;  %s548_s7 = smov (!%p220_p8, %s388_s7), 3 }
  0x1d   : > { %306 = vmatprep.mubr.bf16.mxu0 %v461_v5  ;;  %428 = vset.pattern.permute.xlu0 %v461_v5  ;;  %v231_v7 = vld [vmem:[%s197_s4 + $0x20] sm:$0x33]  ;;  %v431_v10 = vld [vmem:[%s197_s4 + $0x14] ss:$8 sps:$4 sm:$0xff]   ;;  %v433_v12 = vld [vmem:[%s197_s4 + $0x10] ss:$8 sps:$4 sm:$0xff]  }
  0x1e   : > { %235 = vperm.xlu0 %428, %v232_v6   ;;  %v395_v8 = vcombine.high %v231_v7, %v231_v7  ;;  %v394_v9 = vcombine.low %v231_v7, %v231_v7  ;;  %v434_v13 = vld [vmem:[%s197_s4 + $0x4] ss:$8 sps:$4 sm:$0xff]   ;;  %v436_v14 = vld [vmem:[%s197_s4] ss:$8 sps:$4 sm:$0xff]   ;;  %s389_s8 = sshll.u32 %s548_s7, 3 }
  0x1f   : > { %v226_v15 = vld [vmem:[%s540_s0] sm:$0xf]  ;;  %s223_s11 = scalar_lea.vmem %s543_s3, %s389_s8 }
  0x20   : > { %396 = vmatprep.subr.msk.bf16.mxu0 %vm267_vm0, %v395_v8  ;;  %v269_v11 = vsel %vm267_vm0, %v394_v9, 0 }
  0x21   : > { %285 = vmatpush1.bf16.msra.mxu0 %v269_v11 }
  0x22   : > { %286 = vmatprep.subr.bf16.mxu0 %v431_v10 }
  0x25   : > { %287 = vmatpush1.bf16.msra.mxu0 %v433_v12 }
  0x26   : > { %288 = vmatprep.subr.bf16.mxu0 %v434_v13 }
  0x29   : > { %289 = vmatpush1.bf16.msra.mxu0 %v436_v14 }
  0x2c   : > { %397 = vmatmul.mubr.msk.bf16.vlgmr.msra.gmra.mxu0 %vm263_vm1, %v226_v15 }
  0x99   : > { %v236_v16 = vpop.permute.xlu0 %235 }
  0xec   : > { %v308_v17 = vpop.f32.mrf.mxu0 }
  0xed   : > { %v309_v18 = vadd.f32 %v308_v17, %v236_v16 }
  0xee   : > { %v310_v19 = vpop.f32.mrf.mxu0 }
  0xef   : > { %v315_v20 = vmax.f32 %v309_v18, 0.0  ;;  %v311_v21 = vadd.f32 %v310_v19, %v236_v16 }
  0xf0   : > { %v312_v22 = vpop.f32.mrf.mxu0 }
  0xf1   : > { %317 = vst [vmem:[%s223_s11] sm:$0xff] %v315_v20  ;;  %v316_v23 = vmax.f32 %v311_v21, 0.0 }
  0xf2   : > { %v313_v24 = vpop.f32.mrf.mxu0 }
  0xf3   : > { %318 = vst [vmem:[%s223_s11 + $0x8] sm:$0xff] %v316_v23 }
  0xf4 PF: > { %p10_p9 = scmp.ge.s32.totalorder %s499_s16, 4   ;;  %s544_s12 = smov %s455_s13 }
  0xf5   : > { %s545_s13 = smov %s508_s19  ;;  %s546_s14 = smov %s499_s16 }
  0xf6   :  { %12 = sbr.rel (!%p10_p9) target bundleno = 2 (0x2), region = 105 }

// kernel: _lambda_.7
= control target key start
LH: loop header
LB: loop body
LE: loop exit
PB: predicated region body
PF: predicated region fallthrough
CT: control target
= control target key end

     0   :  { %s582_s12 = smov 0   ;;  %s584_s13 = smov 0   ;;  %s640_s0 = inlined_call_operand.vmem [shape: bf16[8,100], index: 0, kind: input, shape index: {}]   ;;  %s641_s1 = inlined_call_operand.vmem [shape: bf16[100,512], index: 1, kind: input, shape index: {}]   ;;  %s642_s2 = inlined_call_operand.vmem [shape: f32[8,1], index: 2, kind: input, shape index: {}]   ;;  %s643_s3 = inlined_call_operand.vmem [shape: f32[8,512], index: 3, kind: output, shape index: {}]  }
   0x1   :  { %s586_s14 = smov 0  }
   0x2 LB: > { %s461_s15 = sadd.s32 4294967295, %s559_s14   ;;  %s599_s16 = sadd.s32 1, %s559_s14   ;;  %s559_s14 = sphi %s586_s14, %s646_s14   ;;  %s555_s13 = sphi %s584_s13, %s645_s13   ;;  %s551_s12 = sphi %s582_s12, %s644_s12  }
   0x3   : > { %s38_s17 = ssub.s32 %s559_s14, %s599_s16  ;;  %s41_s18 = sadd.s32 1, %s555_s13 }
   0x4   : > { %p39_p0 = scmp.eq.s32.totalorder %s38_s17, 0  ;;  %p48_p1 = scmp.ne.s32.totalorder %s555_s13, %s551_s12 }
   0x5   : > { %p49_p2 = scmp.eq.s32.totalorder %s559_s14, 0  ;;  %p464_p4 = scmp.ge.s32.totalorder %s559_s14, 2 }
   0x6   : > { %s608_s19 = scalar_select %p39_p0, %s555_s13, %s41_s18  }
   0x7   : > { %p50_p3 = por %p49_p2, %p48_p1  ;;  %127 = sbr.rel (%p464_p4) target bundleno = 23 (0x17), region = 24 }
   0xc   : > { %130 = sbr.rel (!%p50_p3) target bundleno = 23 (0x17), region = 28  ;;  %s132_s20 = sand.u32 (%p50_p3), 1, %s555_s13  }
   0xd   : > { %s488_s21 = sshll.u32 (%p50_p3), %s559_s14, 3  ;;  %s489_s22 = smul.u32 (%p50_p3), 104, %s132_s20 }
   0xe   : > { %s137_s25 = scalar_lea.vmem (%p50_p3), %s641_s1, %s488_s21 }
   0xf   : > { %v190_v0 = vld [vmem:[%s137_s25] sm:$0xff] (%p50_p3)  ;;  %v192_v1 = vld [vmem:[%s137_s25 + $0x10] sm:$0xff] (%p50_p3)  ;;  %s134_s26 = scalar_lea.vmem (%p50_p3), [#allocation2], %s489_s22 }
  0x10   : > { %v194_v2 = vld [vmem:[%s137_s25 + $0x20] sm:$0xff] (%p50_p3)  ;;  %v196_v3 = vld [vmem:[%s137_s25 + $0x30] sm:$0xff] (%p50_p3)  ;;  %191 = vst [vmem:[%s134_s26] sm:$0xff] (%p50_p3), %v190_v0  ;;  %193 = vst [vmem:[%s134_s26 + $0x8] sm:$0xff] (%p50_p3), %v192_v1 }
  0x11   : > { %v198_v4 = vld [vmem:[%s137_s25 + $0x40] sm:$0xff]  ;;  %v200_v5 = vld [vmem:[%s137_s25 + $0x50] sm:$0xff]  ;;  %195 = vst [vmem:[%s134_s26 + $0x10] sm:$0xff] %v194_v2  ;;  %197 = vst [vmem:[%s134_s26 + $0x18] sm:$0xff] %v196_v3 }
  0x12   : > { %199 = vst [vmem:[%s134_s26 + $0x20] sm:$0xff] %v198_v4  ;;  %201 = vst [vmem:[%s134_s26 + $0x28] sm:$0xff] %v200_v5  ;;  %v202_v6 = vld [vmem:[%s137_s25 + $0x60] sm:$0xff]  ;;  %v204_v7 = vld [vmem:[%s137_s25 + $0x70] sm:$0xff] }
  0x13   : > { %v206_v8 = vld [vmem:[%s137_s25 + $0x80] sm:$0xff]  ;;  %203 = vst [vmem:[%s134_s26 + $0x30] sm:$0xff] %v202_v6  ;;  %205 = vst [vmem:[%s134_s26 + $0x38] sm:$0xff] %v204_v7  ;;  %v208_v9 = vld [vmem:[%s137_s25 + $0x90] sm:$0xff] }
  0x14   : > { %207 = vst [vmem:[%s134_s26 + $0x40] sm:$0xff] %v206_v8  ;;  %v210_v10 = vld [vmem:[%s137_s25 + $0xa0] sm:$0xff]  ;;  %v212_v11 = vld [vmem:[%s137_s25 + $0xb0] sm:$0xff]  ;;  %209 = vst [vmem:[%s134_s26 + $0x48] sm:$0xff] %v208_v9 }
  0x15   : > { %211 = vst [vmem:[%s134_s26 + $0x50] sm:$0xff] %v210_v10  ;;  %213 = vst [vmem:[%s134_s26 + $0x58] sm:$0xff] %v212_v11  ;;  %v214_v12 = vld [vmem:[%s137_s25 + $0xc0] sm:$0xff] }
  0x16   : > { %215 = vst [vmem:[%s134_s26 + $0x60] sm:$0xff] %v214_v12 }
  0x17 PF: > { %p467_p5 = scmp.ge.s32.totalorder %s559_s14, 1  ;;  %p220_p6 = scmp.lt.s32.totalorder %s559_s14, 3 }
  0x19   : > { %p221_p7 = pnand %p467_p5, %p220_p6 }
  0x1a   : > { %s227_s27 = sand.u32 (!%p221_p7), 1, %s551_s12   ;;  %s468_s7 = sshll.u32 (!%p221_p7), %s461_s15, 1 }
  0x1b   : > { %224 = sbr.rel (%p221_p7) target bundleno = 264 (0x108), region = 66  ;;  %p252_p8 = scmp.lt.s32.totalorder (!%p221_p7), %s468_s7, 3 }
  0x1c   : > { %s490_s28 = smul.u32 (!%p221_p7), 104, %s227_s27 }
  0x1e   : > { %s229_s4 = scalar_lea.vmem (!%p221_p7), [#allocation2], %s490_s28 }
  0x20   : > { %v561_v13 = vmov 0   ;;  %v272_v14 = vld [vmem:[%s642_s2] sm:$0xff]  ;;  %vm347_vm0 = vcmask 1041408   ;;  %vm343_vm1 = vcmask 818176   ;;  %s648_s7 = smov (!%p252_p8, %s468_s7), 3 }
  0x21   : > { %386 = vmatprep.mubr.bf16.mxu0 %v561_v13  ;;  %516 = vset.pattern.permute.xlu0 %v561_v13  ;;  %v271_v15 = vld [vmem:[%s229_s4 + $0x60] sm:$0x33]  ;;  %v519_v18 = vld [vmem:[%s229_s4 + $0x54] ss:$8 sps:$4 sm:$0xff]   ;;  %v521_v20 = vld [vmem:[%s229_s4 + $0x50] ss:$8 sps:$4 sm:$0xff]  }
  0x22   : > { %275 = vperm.xlu0 %516, %v272_v14   ;;  %v483_v16 = vcombine.high %v271_v15, %v271_v15  ;;  %v482_v17 = vcombine.low %v271_v15, %v271_v15  ;;  %v522_v21 = vld [vmem:[%s229_s4 + $0x44] ss:$8 sps:$4 sm:$0xff]   ;;  %v524_v22 = vld [vmem:[%s229_s4 + $0x40] ss:$8 sps:$4 sm:$0xff]   ;;  %v525_v23 = vld [vmem:[%s229_s4 + $0x34] ss:$8 sps:$4 sm:$0xff]  }
  0x23   : > { %v527_v24 = vld [vmem:[%s229_s4 + $0x30] ss:$8 sps:$4 sm:$0xff]   ;;  %v528_v25 = vld [vmem:[%s229_s4 + $0x24] ss:$8 sps:$4 sm:$0xff]   ;;  %v530_v26 = vld [vmem:[%s229_s4 + $0x20] ss:$8 sps:$4 sm:$0xff]  }
  0x24   : > { %484 = vmatprep.subr.msk.bf16.mxu0 %vm347_vm0, %v483_v16  ;;  %v349_v19 = vsel %vm347_vm0, %v482_v17, 0  ;;  %v531_v27 = vld [vmem:[%s229_s4 + $0x14] ss:$8 sps:$4 sm:$0xff]   ;;  %v533_v28 = vld [vmem:[%s229_s4 + $0x10] ss:$8 sps:$4 sm:$0xff]   ;;  %s469_s8 = sshll.u32 %s648_s7, 3 }
  0x25   : > { %357 = vmatpush1.bf16.msra.mxu0 %v349_v19  ;;  %v534_v29 = vld [vmem:[%s229_s4 + $0x4] ss:$8 sps:$4 sm:$0xff]   ;;  %v536_v30 = vld [vmem:[%s229_s4] ss:$8 sps:$4 sm:$0xff]   ;;  %s255_s11 = scalar_lea.vmem %s643_s3, %s469_s8 }
  0x26   : > { %358 = vmatprep.subr.bf16.mxu0 %v519_v18  ;;  %v258_v31 = vld [vmem:[%s640_s0] sm:$0xf] }
  0x29   : > { %359 = vmatpush1.bf16.msra.mxu0 %v521_v20 }
  0x2a   : > { %360 = vmatprep.subr.bf16.mxu0 %v522_v21 }
  0x2d   : > { %361 = vmatpush1.bf16.msra.mxu0 %v524_v22 }
  0x2e   : > { %362 = vmatprep.subr.bf16.mxu0 %v525_v23 }
  0x31   : > { %363 = vmatpush1.bf16.msra.mxu0 %v527_v24 }
  0x32   : > { %364 = vmatprep.subr.bf16.mxu0 %v528_v25 }
  0x35   : > { %365 = vmatpush1.bf16.msra.mxu0 %v530_v26 }
  0x36   : > { %366 = vmatprep.subr.bf16.mxu0 %v531_v27 }
  0x39   : > { %367 = vmatpush1.bf16.msra.mxu0 %v533_v28 }
  0x3a   : > { %368 = vmatprep.subr.bf16.mxu0 %v534_v29 }
  0x3d   : > { %369 = vmatpush1.bf16.msra.mxu0 %v536_v30 }
  0x40   : > { %485 = vmatmul.mubr.msk.bf16.vlgmr.msra.gmra.mxu0 %vm343_vm1, %v258_v31 }
  0x9d   : > { %v276_v32 = vpop.permute.xlu0 %275 }
 0x100   : > { %v388_v33 = vpop.f32.mrf.mxu0 }
 0x101   : > { %v389_v34 = vadd.f32 %v388_v33, %v276_v32 }
 0x102   : > { %v390_v35 = vpop.f32.mrf.mxu0 }
 0x103   : > { %v395_v36 = vmax.f32 %v389_v34, 0.0  ;;  %v391_v37 = vadd.f32 %v390_v35, %v276_v32 }
 0x104   : > { %v392_v38 = vpop.f32.mrf.mxu0 }
 0x105   : > { %397 = vst [vmem:[%s255_s11] sm:$0xff] %v395_v36  ;;  %v396_v39 = vmax.f32 %v391_v37, 0.0 }
 0x106   : > { %v393_v40 = vpop.f32.mrf.mxu0 }
 0x107   : > { %398 = vst [vmem:[%s255_s11 + $0x8] sm:$0xff] %v396_v39 }
 0x108 PF: > { %p10_p9 = scmp.ge.s32.totalorder %s599_s16, 4   ;;  %s644_s12 = smov %s555_s13 }
 0x109   : > { %s645_s13 = smov %s608_s19  ;;  %s646_s14 = smov %s599_s16 }
 0x10a   :  { %12 = sbr.rel (!%p10_p9) target bundleno = 2 (0x2), region = 105 }

</bundles_post_ra>
